<compile_context>
chip_gen: v7x
topology: tpu7x:2x2x1
jax: 0.10.0
libtpu: 0.0.40
codegen_flags: <defaults>
</compile_context>

<pallas_src>
import jax
import jax.numpy as jnp
from jax.experimental import pallas as pl
from jax.experimental.pallas import tpu as pltpu


def _fused_two_linear_kernel(x_ref, w1t_ref, w2t_ref, o_ref):
    # Both matmuls fused on one VMEM-resident batch tile; f32 MXU accumulation.
    h = jnp.dot(x_ref[...], w1t_ref[...], preferred_element_type=jnp.float32)
    out = jnp.dot(h, w2t_ref[...], preferred_element_type=jnp.float32)
    o_ref[...] = out.astype(o_ref.dtype)


def _round_up(n, m):
    return ((n + m - 1) // m) * m


def _reference(x, w1, w2):
    # Pure-XLA path, identical semantics to MyModel.forward (bias-free Linears).
    return (x @ w1.T) @ w2.T


def two_linear(x, w1, w2, *, block_b=512, use_bf16=False):
    """out = fc2(fc1(x)); w1, w2 are in nn.Linear [out_features, in_features] layout."""
    B, F = x.shape
    H, F1 = w1.shape
    O, H1 = w2.shape
    assert F1 == F and H1 == H, "weight shapes inconsistent with input"
    out_dtype = x.dtype

    # ---- Tiny-shape bypass (perf review #11): below one sublane tile of batch,
    # the Pallas per-step overhead dominates; let XLA fuse the two dots.
    if B < 8:
        return _reference(x, w1, w2).astype(out_dtype)

    # ---- dtype / one-time layout ------------------------------------------------
    compute_dtype = jnp.bfloat16 if use_bf16 else x.dtype
    itemsize = jnp.dtype(compute_dtype).itemsize
    sub = {1: 32, 2: 16}.get(itemsize, 8)  # sublane packing per dtype width

    # One-time relayout to [in, out] so the kernel never transposes on the XLU.
    w1t = jnp.transpose(w1).astype(compute_dtype)   # [F, H]
    w2t = jnp.transpose(w2).astype(compute_dtype)   # [H, O]
    x_in = x.astype(compute_dtype)

    # ---- batch tile ---------------------------------------------------------------
    block_b = max(256, _round_up(block_b, 256))       # MXU-friendly on all generations
    tb = block_b if B >= block_b else _round_up(B, sub)  # small B -> single whole tile

    # ---- generation-aware VMEM budget ----------------------------------------------
    try:
        vmem_cap = int(pltpu.get_tpu_info().vmem_capacity_bytes)
    except Exception:
        vmem_cap = 64 << 20            # conservative: v7x per-TensorCore size
    budget = (vmem_cap * 3) // 4       # leave headroom for compiler scratch

    weight_bytes = (F * H + H * O) * itemsize
    out_itemsize = jnp.dtype(out_dtype).itemsize

    def footprint(t, weight_bufs):
        io = 2 * t * (F * itemsize + O * out_itemsize)   # x/out tiles, double-buffered
        interm = t * H * 4                               # f32 hidden activations
        return weight_bufs * weight_bytes + io + interm + (2 << 20)

    min_tb = sub
    while tb > min_tb and footprint(tb, 2) > budget:
        tb = max(min_tb, _round_up(tb // 2, sub))
    if footprint(min_tb, 1) > budget:
        # Weights alone cannot stay VMEM-resident on this generation: safe XLA fallback
        # rather than a compile-time VMEM failure. (A K-tiled reduction-grid kernel
        # would keep this on the MXU -- see TODO above.)
        return _reference(x, w1, w2).astype(out_dtype)

    grid = (pl.cdiv(B, tb),)   # ragged last block handled by Pallas (no pad/slice)
    vmem_limit = int(min(max(2 * footprint(tb, 2), 16 << 20), budget))

    def call(single_buffer_weights):
        w_kw = {"pipeline_mode": pl.Buffered(1)} if single_buffer_weights else {}
        return pl.pallas_call(
            _fused_two_linear_kernel,
            out_shape=jax.ShapeDtypeStruct((B, O), out_dtype),
            grid_spec=pltpu.PrefetchScalarGridSpec(
                num_scalar_prefetch=0,
                grid=grid,
                in_specs=[
                    pl.BlockSpec((tb, F), lambda i: (i, 0)),          # batch-tiled x
                    pl.BlockSpec((F, H), lambda i: (0, 0), **w_kw),   # fc1 wt, resident
                    pl.BlockSpec((H, O), lambda i: (0, 0), **w_kw),   # fc2 wt, resident
                ],
                out_specs=pl.BlockSpec((tb, O), lambda i: (i, 0)),
            ),
            compiler_params=pltpu.CompilerParams(
                dimension_semantics=("parallel",),  # shard batch tiles across v7x TCs
                vmem_limit_bytes=vmem_limit,
            ),
        )(x_in, w1t, w2t)

    try:
        return call(True)
    except Exception:
        # pl.Buffered(1) (single-buffered resident weights) not accepted by this build:
        # fall back to default double-buffering (costs only 2x the tiny weights).
        return call(False)


if __name__ == "__main__":
    key = jax.random.PRNGKey(0)
    kx1, kx2, k1, k2 = jax.random.split(key, 4)

    F = H = O = 4  # fixed by MyModel: Linear(4,4) -> Linear(4,4), bias=False
    bound = 0.5    # nn.Linear default U(-1/sqrt(fan_in), 1/sqrt(fan_in)), fan_in=4
    w1 = jax.random.uniform(k1, (H, F), minval=-bound, maxval=bound, dtype=jnp.float32)
    w2 = jax.random.uniform(k2, (O, H), minval=-bound, maxval=bound, dtype=jnp.float32)

    # 1) Literal MyModel test shape (batch=2, features=4): takes the XLA bypass path.
    x_small = jax.random.normal(kx1, (2, F), dtype=jnp.float32)
    out_small = two_linear(x_small, w1, w2)
    jax.block_until_ready(out_small)
    ref_small = _reference(x_small, w1, w2)
    assert out_small.shape == ref_small.shape
    assert jnp.allclose(out_small, ref_small, atol=1e-5, rtol=1e-5), "small-batch mismatch"

    # 2) Batch big enough to exercise the Pallas kernel (2 grid steps at tb=512).
    B = 1024
    x_big = jax.random.normal(kx2, (B, F), dtype=jnp.float32)
    out_big = two_linear(x_big, w1, w2, block_b=512)
    jax.block_until_ready(out_big)
    ref_big = _reference(x_big, w1, w2)
    assert out_big.shape == ref_big.shape
    assert jnp.allclose(out_big, ref_big, atol=1e-5, rtol=1e-5), "pallas path mismatch"

    # 3) bf16-streaming variant (halved HBM traffic, f32 accumulation in-kernel).
    out_bf16 = two_linear(x_big, w1, w2, block_b=512, use_bf16=True)
    jax.block_until_ready(out_bf16)
    assert out_bf16.shape == ref_big.shape
    assert jnp.allclose(out_bf16, ref_big, atol=3e-2, rtol=3e-2), "bf16 path mismatch"

    print("KERNEL_OK")
</pallas_src>

<mosaic_0001>
module attributes {stable_mosaic.version = 11 : i64} {
  func.func @_fused_two_linear_kernel(%arg0: i32, %arg1: memref<512x4xf32, #tpu.memory_space<vmem>>, %arg2: memref<4x4xf32, #tpu.memory_space<vmem>>, %arg3: memref<4x4xf32, #tpu.memory_space<vmem>>, %arg4: memref<512x4xf32, #tpu.memory_space<vmem>>) attributes {dimension_semantics = [#tpu.dimension_semantics<parallel>], iteration_bounds = array<i64: 2>, scalar_prefetch = 0 : i64, scratch_operands = 0 : i64, tpu.core_type = #tpu.core_type<tc>, window_params = [{transform_indices = @transform_0, window_bounds = array<i64: 512, 4>}, {pipeline_mode = #tpu.pipeline_mode<synchronous>, transform_indices = @transform_1, window_bounds = array<i64: 4, 4>}, {pipeline_mode = #tpu.pipeline_mode<synchronous>, transform_indices = @transform_2, window_bounds = array<i64: 4, 4>}, {transform_indices = @transform_3, window_bounds = array<i64: 512, 4>}]} {
    %c0 = arith.constant 0 : index
    %c0_0 = arith.constant 0 : index
    %0 = vector.load %arg1[%c0, %c0_0] : memref<512x4xf32, #tpu.memory_space<vmem>>, vector<512x4xf32>
    %c0_1 = arith.constant 0 : index
    %c0_2 = arith.constant 0 : index
    %1 = vector.load %arg2[%c0_1, %c0_2] : memref<4x4xf32, #tpu.memory_space<vmem>>, vector<4x4xf32>
    %cst = arith.constant dense<0.000000e+00> : vector<512x4xf32>
    %2 = tpu.matmul %0, %1, %cst {dimension_numbers = #tpu.dot_dimension_numbers<[1], [0], [0], [1], [0, 0, 1, 1], [], []>} : vector<512x4xf32>, vector<4x4xf32>, vector<512x4xf32> -> vector<512x4xf32>
    %c0_3 = arith.constant 0 : index
    %c0_4 = arith.constant 0 : index
    %3 = vector.load %arg3[%c0_3, %c0_4] : memref<4x4xf32, #tpu.memory_space<vmem>>, vector<4x4xf32>
    %cst_5 = arith.constant dense<0.000000e+00> : vector<512x4xf32>
    %4 = tpu.matmul %2, %3, %cst_5 {dimension_numbers = #tpu.dot_dimension_numbers<[1], [0], [0], [1], [0, 0, 1, 1], [], []>} : vector<512x4xf32>, vector<4x4xf32>, vector<512x4xf32> -> vector<512x4xf32>
    %c0_6 = arith.constant 0 : index
    %c0_7 = arith.constant 0 : index
    %5 = vector.load %arg4[%c0_6, %c0_7] : memref<512x4xf32, #tpu.memory_space<vmem>>, vector<512x4xf32>
    tpu.vector_store %arg4[%c0_6, %c0_7], %4 {strides = array<i32>} : memref<512x4xf32, #tpu.memory_space<vmem>>, vector<512x4xf32>,
    return
  }
  func.func @transform_0(%arg0: i32) -> (i32, i32) {
    %c0_i32 = arith.constant 0 : i32
    %c0_i32_0 = arith.constant 0 : i32
    return %arg0, %c0_i32 : i32, i32
  }
  func.func @transform_1(%arg0: i32) -> (i32, i32) {
    %c0_i32 = arith.constant 0 : i32
    %c0_i32_0 = arith.constant 0 : i32
    %c0_i32_1 = arith.constant 0 : i32
    return %c0_i32, %c0_i32_0 : i32, i32
  }
  func.func @transform_2(%arg0: i32) -> (i32, i32) {
    %c0_i32 = arith.constant 0 : i32
    %c0_i32_0 = arith.constant 0 : i32
    %c0_i32_1 = arith.constant 0 : i32
    return %c0_i32, %c0_i32_0 : i32, i32
  }
  func.func @transform_3(%arg0: i32) -> (i32, i32) {
    %c0_i32 = arith.constant 0 : i32
    %c0_i32_0 = arith.constant 0 : i32
    return %arg0, %c0_i32 : i32, i32
  }
}

module attributes {stable_mosaic.version = 11 : i64} {
  func.func @_fused_two_linear_kernel(%arg0: i32, %arg1: memref<512x4xf32, #tpu.memory_space<vmem>>, %arg2: memref<4x4xf32, #tpu.memory_space<vmem>>, %arg3: memref<4x4xf32, #tpu.memory_space<vmem>>, %arg4: memref<512x4xf32, #tpu.memory_space<vmem>>) attributes {dimension_semantics = [#tpu.dimension_semantics<parallel>], iteration_bounds = array<i64: 2>, scalar_prefetch = 0 : i64, scratch_operands = 0 : i64, tpu.core_type = #tpu.core_type<tc>, window_params = [{transform_indices = @transform_0, window_bounds = array<i64: 512, 4>}, {pipeline_mode = #tpu.pipeline_mode<synchronous>, transform_indices = @transform_1, window_bounds = array<i64: 4, 4>}, {pipeline_mode = #tpu.pipeline_mode<synchronous>, transform_indices = @transform_2, window_bounds = array<i64: 4, 4>}, {transform_indices = @transform_3, window_bounds = array<i64: 512, 4>}]} {
    %c0 = arith.constant 0 : index
    %c0_0 = arith.constant 0 : index
    %0 = vector.load %arg1[%c0, %c0_0] : memref<512x4xf32, #tpu.memory_space<vmem>>, vector<512x4xf32>
    %c0_1 = arith.constant 0 : index
    %c0_2 = arith.constant 0 : index
    %1 = vector.load %arg2[%c0_1, %c0_2] : memref<4x4xf32, #tpu.memory_space<vmem>>, vector<4x4xf32>
    %cst = arith.constant dense<0.000000e+00> : vector<512x4xf32>
    %2 = tpu.matmul %0, %1, %cst {dimension_numbers = #tpu.dot_dimension_numbers<[1], [0], [0], [1], [0, 0, 1, 1], [], []>} : vector<512x4xf32>, vector<4x4xf32>, vector<512x4xf32> -> vector<512x4xf32>
    %c0_3 = arith.constant 0 : index
    %c0_4 = arith.constant 0 : index
    %3 = vector.load %arg3[%c0_3, %c0_4] : memref<4x4xf32, #tpu.memory_space<vmem>>, vector<4x4xf32>
    %cst_5 = arith.constant dense<0.000000e+00> : vector<512x4xf32>
    %4 = tpu.matmul %2, %3, %cst_5 {dimension_numbers = #tpu.dot_dimension_numbers<[1], [0], [0], [1], [0, 0, 1, 1], [], []>} : vector<512x4xf32>, vector<4x4xf32>, vector<512x4xf32> -> vector<512x4xf32>
    %c0_6 = arith.constant 0 : index
    %c0_7 = arith.constant 0 : index
    %5 = vector.load %arg4[%c0_6, %c0_7] : memref<512x4xf32, #tpu.memory_space<vmem>>, vector<512x4xf32>
    tpu.vector_store %arg4[%c0_6, %c0_7], %4 {strides = array<i32>} : memref<512x4xf32, #tpu.memory_space<vmem>>, vector<512x4xf32>,
    return
  }
  func.func @transform_0(%arg0: i32) -> (i32, i32) {
    %c0_i32 = arith.constant 0 : i32
    %c0_i32_0 = arith.constant 0 : i32
    return %arg0, %c0_i32 : i32, i32
  }
  func.func @transform_1(%arg0: i32) -> (i32, i32) {
    %c0_i32 = arith.constant 0 : i32
    %c0_i32_0 = arith.constant 0 : i32
    %c0_i32_1 = arith.constant 0 : i32
    return %c0_i32, %c0_i32_0 : i32, i32
  }
  func.func @transform_2(%arg0: i32) -> (i32, i32) {
    %c0_i32 = arith.constant 0 : i32
    %c0_i32_0 = arith.constant 0 : i32
    %c0_i32_1 = arith.constant 0 : i32
    return %c0_i32, %c0_i32_0 : i32, i32
  }
  func.func @transform_3(%arg0: i32) -> (i32, i32) {
    %c0_i32 = arith.constant 0 : i32
    %c0_i32_0 = arith.constant 0 : i32
    return %arg0, %c0_i32 : i32, i32
  }
}

</mosaic_0001>

<bundles_post_ra>
// kernel: tpu_custom_call.1
= control target key start
LH: loop header
LB: loop body
LE: loop exit
PB: predicated region body
PF: predicated region fallthrough
CT: control target
= control target key end

     0   :  { %s2025_s12 = smov 0   ;;  %s2383_s0 = inlined_call_operand.vmem [shape: f32[1024,4], index: 0, kind: input, shape index: {}]   ;;  %s2384_s1 = inlined_call_operand.vmem [shape: f32[4,4], index: 1, kind: input, shape index: {}]   ;;  %s2385_s2 = inlined_call_operand.vmem [shape: f32[4,4], index: 2, kind: input, shape index: {}]   ;;  %s2386_s3 = inlined_call_operand.vmem [shape: f32[1024,4], index: 3, kind: output, shape index: {}]  }
   0x1 LB: > { %s1522_s13 = sadd.s32 4294967295, %s2003_s12   ;;  %p1526_p0 = scmp.ge.s32.totalorder %s2003_s12, 1  ;;  %s2003_s12 = sphi %s2025_s12, %s13_s12  }
   0x2   : > { %p138_p1 = scmp.lt.s32.totalorder %s2003_s12, 3 }
   0x4   : > { %p139_p2 = pnand %p1526_p0, %p138_p1 }
   0x5   : > { %v238_v0 = vld [vmem:[%s2384_s1] sm:$0xf] (!%p139_p2)  ;;  %vm432_vm0 = vcmask (!%p139_p2), 1043456   ;;  %s1527_s16 = sshll.u32 (!%p139_p2), %s1522_s13, 6  ;;  %vm239_vm1 = vcmask (!%p139_p2), 31744  }
   0x6   : > { %142 = sbr.rel (%p139_p2) target bundleno = 570 (0x23a), region = 32  ;;  %1793 = vmatprep.subr.msk.mxu0 (!%p139_p2), %vm432_vm0, %v238_v0  ;;  %p163_p3 = scmp.lt.s32.totalorder (!%p139_p2), %s1527_s16, 127  ;;  %v821_v46 = vld [vmem:[%s2385_s2] sm:$0xf] (!%p139_p2) }
   0x7   : > { %1794 = vmatpush3.msk.msra.mxu0 (!%p139_p2), %vm432_vm0, %v238_v0  ;;  %1891 = vmatprep.subr.msk.mxu1 (!%p139_p2), %vm432_vm0, %v821_v46 }
   0x8   : > { %1892 = vmatpush3.msk.msra.mxu1 (!%p139_p2), %vm432_vm0, %v821_v46 }
   0xd   : > { %s2388_s16 = smov (!%p163_p3, %s1527_s16), 127 }
   0xe   : > { %s1528_s17 = sshll.u32 %s2388_s16, 3 }
   0xf   : > { %s2046_s20 = scalar_lea.vmem %s2383_s0, %s1528_s17  ;;  %s2250_s25 = scalar_lea.vmem %s2386_s3, %s1528_s17 }
  0x10   : > { %v174_v1 = vld [vmem:[%s2046_s20] sm:$0xff]  ;;  %v175_v2 = vld [vmem:[%s2046_s20 + $0x8] sm:$0xff]  ;;  %v176_v3 = vld [vmem:[%s2046_s20 + $0x10] sm:$0xff] }
  0x11   : > { %1795 = vmatprep.mubr.msk.f32.mxu0 %vm239_vm1, %v174_v1  ;;  %v177_v4 = vld [vmem:[%s2046_s20 + $0x18] sm:$0xff]  ;;  %v178_v5 = vld [vmem:[%s2046_s20 + $0x20] sm:$0xff]  ;;  %v179_v6 = vld [vmem:[%s2046_s20 + $0x28] sm:$0xff] }
  0x12   : > { %1796 = vmatmul.mubr.msk.f32.vlgmr.msra.gmra.mrb[0].mxu0 %vm239_vm1, %v175_v2  ;;  %v180_v7 = vld [vmem:[%s2046_s20 + $0x30] sm:$0xff]  ;;  %v181_v8 = vld [vmem:[%s2046_s20 + $0x38] sm:$0xff]  ;;  %v182_v9 = vld [vmem:[%s2046_s20 + $0x40] sm:$0xff] }
  0x13   : > { %1798 = vmatprep.mubr.msk.f32.mxu0 %vm239_vm1, %v176_v3  ;;  %v183_v10 = vld [vmem:[%s2046_s20 + $0x48] sm:$0xff]  ;;  %v184_v11 = vld [vmem:[%s2046_s20 + $0x50] sm:$0xff]  ;;  %v185_v12 = vld [vmem:[%s2046_s20 + $0x58] sm:$0xff] }
  0x14   : > { %v186_v13 = vld [vmem:[%s2046_s20 + $0x60] sm:$0xff]  ;;  %v187_v14 = vld [vmem:[%s2046_s20 + $0x68] sm:$0xff]  ;;  %v188_v15 = vld [vmem:[%s2046_s20 + $0x70] sm:$0xff] }
  0x15   : > { %v189_v16 = vld [vmem:[%s2046_s20 + $0x78] sm:$0xff]  ;;  %v190_v17 = vld [vmem:[%s2046_s20 + $0x80] sm:$0xff]  ;;  %v191_v18 = vld [vmem:[%s2046_s20 + $0x88] sm:$0xff] }
  0x16   : > { %1799 = vmatmul.mubr.msk.f32.gmra.mrb[2].mxu0 %vm239_vm1, %v177_v4  ;;  %v192_v19 = vld [vmem:[%s2046_s20 + $0x90] sm:$0xff]  ;;  %v193_v20 = vld [vmem:[%s2046_s20 + $0x98] sm:$0xff]  ;;  %v194_v21 = vld [vmem:[%s2046_s20 + $0xa0] sm:$0xff] }
  0x17   : > { %1801 = vmatprep.mubr.msk.f32.mxu0 %vm239_vm1, %v178_v5  ;;  %v195_v22 = vld [vmem:[%s2046_s20 + $0xa8] sm:$0xff]  ;;  %v196_v23 = vld [vmem:[%s2046_s20 + $0xb0] sm:$0xff]  ;;  %v197_v24 = vld [vmem:[%s2046_s20 + $0xb8] sm:$0xff] }
  0x18   : > { %v198_v25 = vld [vmem:[%s2046_s20 + $0xc0] sm:$0xff]  ;;  %v199_v26 = vld [vmem:[%s2046_s20 + $0xc8] sm:$0xff]  ;;  %v200_v27 = vld [vmem:[%s2046_s20 + $0xd0] sm:$0xff] }
  0x19   : > { %v201_v28 = vld [vmem:[%s2046_s20 + $0xd8] sm:$0xff]  ;;  %v202_v29 = vld [vmem:[%s2046_s20 + $0xe0] sm:$0xff]  ;;  %v203_v30 = vld [vmem:[%s2046_s20 + $0xe8] sm:$0xff] }
  0x1a   : > { %1802 = vmatmul.mubr.msk.f32.gmra.mrb[4].mxu0 %vm239_vm1, %v179_v6  ;;  %v204_v31 = vld [vmem:[%s2046_s20 + $0xf0] sm:$0xff]  ;;  %v205_v32 = vld [vmem:[%s2046_s20 + $0xf8] sm:$0xff]  ;;  %v206_v33 = vld [vmem:[%s2046_s20 + $0x100] sm:$0xff] }
  0x1b   : > { %1804 = vmatprep.mubr.msk.f32.mxu0 %vm239_vm1, %v180_v7  ;;  %v207_v34 = vld [vmem:[%s2046_s20 + $0x108] sm:$0xff]  ;;  %v208_v35 = vld [vmem:[%s2046_s20 + $0x110] sm:$0xff]  ;;  %v209_v36 = vld [vmem:[%s2046_s20 + $0x118] sm:$0xff] }
  0x1c   : > { %v210_v37 = vld [vmem:[%s2046_s20 + $0x120] sm:$0xff]  ;;  %v211_v38 = vld [vmem:[%s2046_s20 + $0x128] sm:$0xff]  ;;  %v212_v39 = vld [vmem:[%s2046_s20 + $0x130] sm:$0xff] }
  0x1d   : > { %v213_v40 = vld [vmem:[%s2046_s20 + $0x138] sm:$0xff]  ;;  %v214_v41 = vld [vmem:[%s2046_s20 + $0x140] sm:$0xff]  ;;  %v215_v42 = vld [vmem:[%s2046_s20 + $0x148] sm:$0xff] }
  0x1e   : > { %1805 = vmatmul.mubr.msk.f32.gmra.mrb[6].mxu0 %vm239_vm1, %v181_v8  ;;  %v216_v43 = vld [vmem:[%s2046_s20 + $0x150] sm:$0xff]  ;;  %v217_v44 = vld [vmem:[%s2046_s20 + $0x158] sm:$0xff]  ;;  %v218_v45 = vld [vmem:[%s2046_s20 + $0x160] sm:$0xff] }
  0x1f   : > { %1807 = vmatprep.mubr.msk.f32.mxu0 %vm239_vm1, %v182_v9  ;;  %v219_v47 = vld [vmem:[%s2046_s20 + $0x168] sm:$0xff]  ;;  %v220_v48 = vld [vmem:[%s2046_s20 + $0x170] sm:$0xff]  ;;  %v221_v49 = vld [vmem:[%s2046_s20 + $0x178] sm:$0xff] }
  0x20   : > { %v222_v50 = vld [vmem:[%s2046_s20 + $0x180] sm:$0xff]  ;;  %v223_v51 = vld [vmem:[%s2046_s20 + $0x188] sm:$0xff]  ;;  %v224_v52 = vld [vmem:[%s2046_s20 + $0x190] sm:$0xff] }
  0x21   : > { %v225_v53 = vld [vmem:[%s2046_s20 + $0x198] sm:$0xff]  ;;  %v226_v54 = vld [vmem:[%s2046_s20 + $0x1a0] sm:$0xff]  ;;  %v227_v55 = vld [vmem:[%s2046_s20 + $0x1a8] sm:$0xff] }
  0x22   : > { %1808 = vmatmul.mubr.msk.f32.gmra.mrb[8].mxu0 %vm239_vm1, %v183_v10  ;;  %v228_v56 = vld [vmem:[%s2046_s20 + $0x1b0] sm:$0xff]  ;;  %v229_v57 = vld [vmem:[%s2046_s20 + $0x1b8] sm:$0xff]  ;;  %v230_v58 = vld [vmem:[%s2046_s20 + $0x1c0] sm:$0xff] }
  0x23   : > { %1810 = vmatprep.mubr.msk.f32.mxu0 %vm239_vm1, %v184_v11  ;;  %v231_v59 = vld [vmem:[%s2046_s20 + $0x1c8] sm:$0xff]  ;;  %v232_v60 = vld [vmem:[%s2046_s20 + $0x1d0] sm:$0xff]  ;;  %v233_v61 = vld [vmem:[%s2046_s20 + $0x1d8] sm:$0xff] }
  0x24   : > { %v234_v62 = vld [vmem:[%s2046_s20 + $0x1e0] sm:$0xff]  ;;  %v235_v63 = vld [vmem:[%s2046_s20 + $0x1e8] sm:$0xff]  ;;  %v236_v0 = vld [vmem:[%s2046_s20 + $0x1f0] sm:$0xff] }
  0x25   : > { %v237_v1 = vld [vmem:[%s2046_s20 + $0x1f8] sm:$0xff] }
  0x26   : > { %1811 = vmatmul.mubr.msk.f32.gmra.mrb[10].mxu0 %vm239_vm1, %v185_v12 }
  0x27   : > { %1813 = vmatprep.mubr.msk.f32.mxu0 %vm239_vm1, %v186_v13 }
  0x2a   : > { %1814 = vmatmul.mubr.msk.f32.gmra.mrb[12].mxu0 %vm239_vm1, %v187_v14 }
  0x2b   : > { %1816 = vmatprep.mubr.msk.f32.mxu0 %vm239_vm1, %v188_v15 }
  0x2e   : > { %1817 = vmatmul.mubr.msk.f32.gmra.mrb[14].mxu0 %vm239_vm1, %v189_v16 }
  0x2f   : > { %1819 = vmatprep.mubr.msk.f32.mxu0 %vm239_vm1, %v190_v17 }
  0x32   : > { %1820 = vmatmul.mubr.msk.f32.gmra.mrb[16].mxu0 %vm239_vm1, %v191_v18 }
  0x33   : > { %1822 = vmatprep.mubr.msk.f32.mxu0 %vm239_vm1, %v192_v19 }
  0x36   : > { %1823 = vmatmul.mubr.msk.f32.gmra.mrb[18].mxu0 %vm239_vm1, %v193_v20 }
  0x37   : > { %1825 = vmatprep.mubr.msk.f32.mxu0 %vm239_vm1, %v194_v21 }
  0x3a   : > { %1826 = vmatmul.mubr.msk.f32.gmra.mrb[20].mxu0 %vm239_vm1, %v195_v22 }
  0x3b   : > { %1828 = vmatprep.mubr.msk.f32.mxu0 %vm239_vm1, %v196_v23 }
  0x3e   : > { %1829 = vmatmul.mubr.msk.f32.gmra.mrb[22].mxu0 %vm239_vm1, %v197_v24 }
  0x3f   : > { %1831 = vmatprep.mubr.msk.f32.mxu0 %vm239_vm1, %v198_v25 }
  0x42   : > { %1832 = vmatmul.mubr.msk.f32.gmra.mrb[24].mxu0 %vm239_vm1, %v199_v26 }
  0x43   : > { %1834 = vmatprep.mubr.msk.f32.mxu0 %vm239_vm1, %v200_v27 }
  0x46   : > { %1835 = vmatmul.mubr.msk.f32.gmra.mrb[26].mxu0 %vm239_vm1, %v201_v28 }
  0x47   : > { %1837 = vmatprep.mubr.msk.f32.mxu0 %vm239_vm1, %v202_v29 }
  0x4a   : > { %1838 = vmatmul.mubr.msk.f32.gmra.mrb[28].mxu0 %vm239_vm1, %v203_v30 }
  0x4b   : > { %1840 = vmatprep.mubr.msk.f32.mxu0 %vm239_vm1, %v204_v31 }
  0x4e   : > { %1841 = vmatmul.mubr.msk.f32.gmra.mrb[30].mxu0 %vm239_vm1, %v205_v32 }
  0x4f   : > { %1843 = vmatprep.mubr.msk.f32.mxu0 %vm239_vm1, %v206_v33 }
  0x52   : > { %1844 = vmatmul.mubr.msk.f32.gmra.mrb[32].mxu0 %vm239_vm1, %v207_v34 }
  0x53   : > { %1846 = vmatprep.mubr.msk.f32.mxu0 %vm239_vm1, %v208_v35 }
  0x56   : > { %1847 = vmatmul.mubr.msk.f32.gmra.mrb[34].mxu0 %vm239_vm1, %v209_v36 }
  0x57   : > { %1849 = vmatprep.mubr.msk.f32.mxu0 %vm239_vm1, %v210_v37 }
  0x5a   : > { %1850 = vmatmul.mubr.msk.f32.gmra.mrb[36].mxu0 %vm239_vm1, %v211_v38 }
  0x5b   : > { %1852 = vmatprep.mubr.msk.f32.mxu0 %vm239_vm1, %v212_v39 }
  0x5e   : > { %1853 = vmatmul.mubr.msk.f32.gmra.mrb[38].mxu0 %vm239_vm1, %v213_v40 }
  0x5f   : > { %1855 = vmatprep.mubr.msk.f32.mxu0 %vm239_vm1, %v214_v41 }
  0x62   : > { %1856 = vmatmul.mubr.msk.f32.gmra.mrb[40].mxu0 %vm239_vm1, %v215_v42 }
  0x63   : > { %1858 = vmatprep.mubr.msk.f32.mxu0 %vm239_vm1, %v216_v43 }
  0x66   : > { %1859 = vmatmul.mubr.msk.f32.gmra.mrb[42].mxu0 %vm239_vm1, %v217_v44 }
  0x67   : > { %1861 = vmatprep.mubr.msk.f32.mxu0 %vm239_vm1, %v218_v45 }
  0x6a   : > { %1862 = vmatmul.mubr.msk.f32.gmra.mrb[44].mxu0 %vm239_vm1, %v219_v47 }
  0x6b   : > { %1864 = vmatprep.mubr.msk.f32.mxu0 %vm239_vm1, %v220_v48 }
  0x6e   : > { %1865 = vmatmul.mubr.msk.f32.gmra.mrb[46].mxu0 %vm239_vm1, %v221_v49 }
  0x6f   : > { %1867 = vmatprep.mubr.msk.f32.mxu0 %vm239_vm1, %v222_v50 }
  0x72   : > { %1868 = vmatmul.mubr.msk.f32.gmra.mrb[48].mxu0 %vm239_vm1, %v223_v51 }
  0x73   : > { %1870 = vmatprep.mubr.msk.f32.mxu0 %vm239_vm1, %v224_v52 }
  0x76   : > { %1871 = vmatmul.mubr.msk.f32.gmra.mrb[50].mxu0 %vm239_vm1, %v225_v53 }
  0x77   : > { %1873 = vmatprep.mubr.msk.f32.mxu0 %vm239_vm1, %v226_v54 }
  0x7a   : > { %1874 = vmatmul.mubr.msk.f32.gmra.mrb[52].mxu0 %vm239_vm1, %v227_v55 }
  0x7b   : > { %1876 = vmatprep.mubr.msk.f32.mxu0 %vm239_vm1, %v228_v56 }
  0x7e   : > { %1877 = vmatmul.mubr.msk.f32.gmra.mrb[54].mxu0 %vm239_vm1, %v229_v57 }
  0x7f   : > { %1879 = vmatprep.mubr.msk.f32.mxu0 %vm239_vm1, %v230_v58 }
  0x82   : > { %1880 = vmatmul.mubr.msk.f32.gmra.mrb[56].mxu0 %vm239_vm1, %v231_v59 }
  0x83   : > { %1882 = vmatprep.mubr.msk.f32.mxu0 %vm239_vm1, %v232_v60 }
  0x86   : > { %1883 = vmatmul.mubr.msk.f32.gmra.mrb[58].mxu0 %vm239_vm1, %v233_v61 }
  0x87   : > { %1885 = vmatprep.mubr.msk.f32.mxu0 %vm239_vm1, %v234_v62 }
  0x8a   : > { %1886 = vmatmul.mubr.msk.f32.gmra.mrb[60].mxu0 %vm239_vm1, %v235_v63 }
  0x8b   : > { %1888 = vmatprep.mubr.msk.f32.mxu0 %vm239_vm1, %v236_v0 }
  0x8e   : > { %1889 = vmatmul.mubr.msk.f32.gmra.mrb[62].mxu0 %vm239_vm1, %v237_v1 }
  0xe5   : > { %v1797_v2 = vpop.f32.mrb[0].mxu0 }
  0xe6   : > { %v502_v3 = vpop.f32.mrb[1].mxu0 }
  0xe7   : > { %1893 = vmatprep.mubr.msk.f32.mxu1 %vm239_vm1, %v502_v3 }
  0xe8   : > { %1894 = vmatmul.mubr.msk.f32.vlgmr.msra.gmra.mrb[0].mxu1 %vm239_vm1, %v1797_v2 }
  0xe9   : > { %v1800_v4 = vpop.f32.mrb[2].mxu0 }
  0xea   : > { %v512_v5 = vpop.f32.mrb[3].mxu0 }
  0xeb   : > { %1896 = vmatprep.mubr.msk.f32.mxu1 %vm239_vm1, %v512_v5 }
  0xec   : > { %1897 = vmatmul.mubr.msk.f32.gmra.mrb[2].mxu1 %vm239_vm1, %v1800_v4 }
  0xed   : > { %v1803_v6 = vpop.f32.mrb[4].mxu0 }
  0xee   : > { %v522_v7 = vpop.f32.mrb[5].mxu0 }
  0xef   : > { %1899 = vmatprep.mubr.msk.f32.mxu1 %vm239_vm1, %v522_v7 }
  0xf0   : > { %1900 = vmatmul.mubr.msk.f32.gmra.mrb[4].mxu1 %vm239_vm1, %v1803_v6 }
  0xf1   : > { %v1806_v8 = vpop.f32.mrb[6].mxu0 }
  0xf2   : > { %v532_v9 = vpop.f32.mrb[7].mxu0 }
  0xf3   : > { %1902 = vmatprep.mubr.msk.f32.mxu1 %vm239_vm1, %v532_v9 }
  0xf4   : > { %1903 = vmatmul.mubr.msk.f32.gmra.mrb[6].mxu1 %vm239_vm1, %v1806_v8 }
  0xf5   : > { %v1809_v10 = vpop.f32.mrb[8].mxu0 }
  0xf6   : > { %v542_v11 = vpop.f32.mrb[9].mxu0 }
  0xf7   : > { %1905 = vmatprep.mubr.msk.f32.mxu1 %vm239_vm1, %v542_v11 }
  0xf8   : > { %1906 = vmatmul.mubr.msk.f32.gmra.mrb[8].mxu1 %vm239_vm1, %v1809_v10 }
  0xf9   : > { %v1812_v12 = vpop.f32.mrb[10].mxu0 }
  0xfa   : > { %v552_v13 = vpop.f32.mrb[11].mxu0 }
  0xfb   : > { %1908 = vmatprep.mubr.msk.f32.mxu1 %vm239_vm1, %v552_v13 }
  0xfc   : > { %1909 = vmatmul.mubr.msk.f32.gmra.mrb[10].mxu1 %vm239_vm1, %v1812_v12 }
  0xfd   : > { %v1815_v14 = vpop.f32.mrb[12].mxu0 }
  0xfe   : > { %v562_v15 = vpop.f32.mrb[13].mxu0 }
  0xff   : > { %1911 = vmatprep.mubr.msk.f32.mxu1 %vm239_vm1, %v562_v15 }
 0x100   : > { %1912 = vmatmul.mubr.msk.f32.gmra.mrb[12].mxu1 %vm239_vm1, %v1815_v14 }
 0x101   : > { %v1818_v16 = vpop.f32.mrb[14].mxu0 }
 0x102   : > { %v572_v17 = vpop.f32.mrb[15].mxu0 }
 0x103   : > { %1914 = vmatprep.mubr.msk.f32.mxu1 %vm239_vm1, %v572_v17 }
 0x104   : > { %1915 = vmatmul.mubr.msk.f32.gmra.mrb[14].mxu1 %vm239_vm1, %v1818_v16 }
 0x105   : > { %v1821_v18 = vpop.f32.mrb[16].mxu0 }
 0x106   : > { %v582_v19 = vpop.f32.mrb[17].mxu0 }
 0x107   : > { %1917 = vmatprep.mubr.msk.f32.mxu1 %vm239_vm1, %v582_v19 }
 0x108   : > { %1918 = vmatmul.mubr.msk.f32.gmra.mrb[16].mxu1 %vm239_vm1, %v1821_v18 }
 0x109   : > { %v1824_v20 = vpop.f32.mrb[18].mxu0 }
 0x10a   : > { %v592_v21 = vpop.f32.mrb[19].mxu0 }
 0x10b   : > { %1920 = vmatprep.mubr.msk.f32.mxu1 %vm239_vm1, %v592_v21 }
 0x10c   : > { %1921 = vmatmul.mubr.msk.f32.gmra.mrb[18].mxu1 %vm239_vm1, %v1824_v20 }
 0x10d   : > { %v1827_v22 = vpop.f32.mrb[20].mxu0 }
 0x10e   : > { %v602_v23 = vpop.f32.mrb[21].mxu0 }
 0x10f   : > { %1923 = vmatprep.mubr.msk.f32.mxu1 %vm239_vm1, %v602_v23 }
 0x110   : > { %1924 = vmatmul.mubr.msk.f32.gmra.mrb[20].mxu1 %vm239_vm1, %v1827_v22 }
 0x111   : > { %v1830_v24 = vpop.f32.mrb[22].mxu0 }
 0x112   : > { %v612_v25 = vpop.f32.mrb[23].mxu0 }
 0x113   : > { %1926 = vmatprep.mubr.msk.f32.mxu1 %vm239_vm1, %v612_v25 }
 0x114   : > { %1927 = vmatmul.mubr.msk.f32.gmra.mrb[22].mxu1 %vm239_vm1, %v1830_v24 }
 0x115   : > { %v1833_v26 = vpop.f32.mrb[24].mxu0 }
 0x116   : > { %v622_v27 = vpop.f32.mrb[25].mxu0 }
 0x117   : > { %1929 = vmatprep.mubr.msk.f32.mxu1 %vm239_vm1, %v622_v27 }
 0x118   : > { %1930 = vmatmul.mubr.msk.f32.gmra.mrb[24].mxu1 %vm239_vm1, %v1833_v26 }
 0x119   : > { %v1836_v28 = vpop.f32.mrb[26].mxu0 }
 0x11a   : > { %v632_v29 = vpop.f32.mrb[27].mxu0 }
 0x11b   : > { %1932 = vmatprep.mubr.msk.f32.mxu1 %vm239_vm1, %v632_v29 }
 0x11c   : > { %1933 = vmatmul.mubr.msk.f32.gmra.mrb[26].mxu1 %vm239_vm1, %v1836_v28 }
 0x11d   : > { %v1839_v30 = vpop.f32.mrb[28].mxu0 }
 0x11e   : > { %v642_v31 = vpop.f32.mrb[29].mxu0 }
 0x11f   : > { %1935 = vmatprep.mubr.msk.f32.mxu1 %vm239_vm1, %v642_v31 }
 0x120   : > { %1936 = vmatmul.mubr.msk.f32.gmra.mrb[28].mxu1 %vm239_vm1, %v1839_v30 }
 0x121   : > { %v1842_v32 = vpop.f32.mrb[30].mxu0 }
 0x122   : > { %v652_v33 = vpop.f32.mrb[31].mxu0 }
 0x123   : > { %1938 = vmatprep.mubr.msk.f32.mxu1 %vm239_vm1, %v652_v33 }
 0x124   : > { %1939 = vmatmul.mubr.msk.f32.gmra.mrb[30].mxu1 %vm239_vm1, %v1842_v32 }
 0x125   : > { %v1845_v34 = vpop.f32.mrb[32].mxu0 }
 0x126   : > { %v662_v35 = vpop.f32.mrb[33].mxu0 }
 0x127   : > { %1941 = vmatprep.mubr.msk.f32.mxu1 %vm239_vm1, %v662_v35 }
 0x128   : > { %1942 = vmatmul.mubr.msk.f32.gmra.mrb[32].mxu1 %vm239_vm1, %v1845_v34 }
 0x129   : > { %v1848_v36 = vpop.f32.mrb[34].mxu0 }
 0x12a   : > { %v672_v37 = vpop.f32.mrb[35].mxu0 }
 0x12b   : > { %1944 = vmatprep.mubr.msk.f32.mxu1 %vm239_vm1, %v672_v37 }
 0x12c   : > { %1945 = vmatmul.mubr.msk.f32.gmra.mrb[34].mxu1 %vm239_vm1, %v1848_v36 }
 0x12d   : > { %v1851_v38 = vpop.f32.mrb[36].mxu0 }
 0x12e   : > { %v682_v39 = vpop.f32.mrb[37].mxu0 }
 0x12f   : > { %1947 = vmatprep.mubr.msk.f32.mxu1 %vm239_vm1, %v682_v39 }
 0x130   : > { %1948 = vmatmul.mubr.msk.f32.gmra.mrb[36].mxu1 %vm239_vm1, %v1851_v38 }
 0x131   : > { %v1854_v40 = vpop.f32.mrb[38].mxu0 }
 0x132   : > { %v692_v41 = vpop.f32.mrb[39].mxu0 }
 0x133   : > { %1950 = vmatprep.mubr.msk.f32.mxu1 %vm239_vm1, %v692_v41 }
 0x134   : > { %1951 = vmatmul.mubr.msk.f32.gmra.mrb[38].mxu1 %vm239_vm1, %v1854_v40 }
 0x135   : > { %v1857_v42 = vpop.f32.mrb[40].mxu0 }
 0x136   : > { %v702_v43 = vpop.f32.mrb[41].mxu0 }
 0x137   : > { %1953 = vmatprep.mubr.msk.f32.mxu1 %vm239_vm1, %v702_v43 }
 0x138   : > { %1954 = vmatmul.mubr.msk.f32.gmra.mrb[40].mxu1 %vm239_vm1, %v1857_v42 }
 0x139   : > { %v1860_v44 = vpop.f32.mrb[42].mxu0 }
 0x13a   : > { %v712_v45 = vpop.f32.mrb[43].mxu0 }
 0x13b   : > { %1956 = vmatprep.mubr.msk.f32.mxu1 %vm239_vm1, %v712_v45 }
 0x13c   : > { %1957 = vmatmul.mubr.msk.f32.gmra.mrb[42].mxu1 %vm239_vm1, %v1860_v44 }
 0x13d   : > { %v1863_v46 = vpop.f32.mrb[44].mxu0 }
 0x13e   : > { %v722_v47 = vpop.f32.mrb[45].mxu0 }
 0x13f   : > { %1959 = vmatprep.mubr.msk.f32.mxu1 %vm239_vm1, %v722_v47 }
 0x140   : > { %1960 = vmatmul.mubr.msk.f32.gmra.mrb[44].mxu1 %vm239_vm1, %v1863_v46 }
 0x141   : > { %v1866_v48 = vpop.f32.mrb[46].mxu0 }
 0x142   : > { %v732_v49 = vpop.f32.mrb[47].mxu0 }
 0x143   : > { %1962 = vmatprep.mubr.msk.f32.mxu1 %vm239_vm1, %v732_v49 }
 0x144   : > { %1963 = vmatmul.mubr.msk.f32.gmra.mrb[46].mxu1 %vm239_vm1, %v1866_v48 }
 0x145   : > { %v1869_v50 = vpop.f32.mrb[48].mxu0 }
 0x146   : > { %v742_v51 = vpop.f32.mrb[49].mxu0 }
 0x147   : > { %1965 = vmatprep.mubr.msk.f32.mxu1 %vm239_vm1, %v742_v51 }
 0x148   : > { %1966 = vmatmul.mubr.msk.f32.gmra.mrb[48].mxu1 %vm239_vm1, %v1869_v50 }
 0x149   : > { %v1872_v52 = vpop.f32.mrb[50].mxu0 }
 0x14a   : > { %v752_v53 = vpop.f32.mrb[51].mxu0 }
 0x14b   : > { %1968 = vmatprep.mubr.msk.f32.mxu1 %vm239_vm1, %v752_v53 }
 0x14c   : > { %1969 = vmatmul.mubr.msk.f32.gmra.mrb[50].mxu1 %vm239_vm1, %v1872_v52 }
 0x14d   : > { %v1875_v54 = vpop.f32.mrb[52].mxu0 }
 0x14e   : > { %v762_v55 = vpop.f32.mrb[53].mxu0 }
 0x14f   : > { %1971 = vmatprep.mubr.msk.f32.mxu1 %vm239_vm1, %v762_v55 }
 0x150   : > { %1972 = vmatmul.mubr.msk.f32.gmra.mrb[52].mxu1 %vm239_vm1, %v1875_v54 }
 0x151   : > { %v1878_v56 = vpop.f32.mrb[54].mxu0 }
 0x152   : > { %v772_v57 = vpop.f32.mrb[55].mxu0 }
 0x153   : > { %1974 = vmatprep.mubr.msk.f32.mxu1 %vm239_vm1, %v772_v57 }
 0x154   : > { %1975 = vmatmul.mubr.msk.f32.gmra.mrb[54].mxu1 %vm239_vm1, %v1878_v56 }
 0x155   : > { %v1881_v58 = vpop.f32.mrb[56].mxu0 }
 0x156   : > { %v782_v59 = vpop.f32.mrb[57].mxu0 }
 0x157   : > { %1977 = vmatprep.mubr.msk.f32.mxu1 %vm239_vm1, %v782_v59 }
 0x158   : > { %1978 = vmatmul.mubr.msk.f32.gmra.mrb[56].mxu1 %vm239_vm1, %v1881_v58 }
 0x159   : > { %v1884_v60 = vpop.f32.mrb[58].mxu0 }
 0x15a   : > { %v792_v61 = vpop.f32.mrb[59].mxu0 }
 0x15b   : > { %1980 = vmatprep.mubr.msk.f32.mxu1 %vm239_vm1, %v792_v61 }
 0x15c   : > { %1981 = vmatmul.mubr.msk.f32.gmra.mrb[58].mxu1 %vm239_vm1, %v1884_v60 }
 0x15d   : > { %v1887_v62 = vpop.f32.mrb[60].mxu0 }
 0x15e   : > { %v802_v63 = vpop.f32.mrb[61].mxu0 }
 0x15f   : > { %1983 = vmatprep.mubr.msk.f32.mxu1 %vm239_vm1, %v802_v63 }
 0x160   : > { %1984 = vmatmul.mubr.msk.f32.gmra.mrb[60].mxu1 %vm239_vm1, %v1887_v62 }
 0x161   : > { %v1890_v0 = vpop.f32.mrb[62].mxu0 }
 0x162   : > { %v812_v1 = vpop.f32.mrb[63].mxu0 }
 0x163   : > { %1986 = vmatprep.mubr.msk.f32.mxu1 %vm239_vm1, %v812_v1 }
 0x164   : > { %1987 = vmatmul.mubr.msk.f32.gmra.mrb[62].mxu1 %vm239_vm1, %v1890_v0 }
 0x1bb   : > { %v1895_v2 = vpop.f32.mrb[0].mxu1 }
 0x1bc   : > { %1403 = vst.msk [vmem:[%s2250_s25 + $0x8] sm:$0xff] %vm239_vm1, %v1895_v2  ;;  %v1083_v3 = vpop.f32.mrb[1].mxu1 }
 0x1bd   : > { %1402 = vst.msk [vmem:[%s2250_s25] sm:$0xff] %vm239_vm1, %v1083_v3 }
 0x1bf   : > { %v1898_v4 = vpop.f32.mrb[2].mxu1 }
 0x1c0   : > { %1405 = vst.msk [vmem:[%s2250_s25 + $0x18] sm:$0xff] %vm239_vm1, %v1898_v4  ;;  %v1093_v5 = vpop.f32.mrb[3].mxu1 }
 0x1c1   : > { %1404 = vst.msk [vmem:[%s2250_s25 + $0x10] sm:$0xff] %vm239_vm1, %v1093_v5 }
 0x1c3   : > { %v1901_v6 = vpop.f32.mrb[4].mxu1 }
 0x1c4   : > { %1407 = vst.msk [vmem:[%s2250_s25 + $0x28] sm:$0xff] %vm239_vm1, %v1901_v6  ;;  %v1103_v7 = vpop.f32.mrb[5].mxu1 }
 0x1c5   : > { %1406 = vst.msk [vmem:[%s2250_s25 + $0x20] sm:$0xff] %vm239_vm1, %v1103_v7 }
 0x1c7   : > { %v1904_v8 = vpop.f32.mrb[6].mxu1 }
 0x1c8   : > { %1409 = vst.msk [vmem:[%s2250_s25 + $0x38] sm:$0xff] %vm239_vm1, %v1904_v8  ;;  %v1113_v9 = vpop.f32.mrb[7].mxu1 }
 0x1c9   : > { %1408 = vst.msk [vmem:[%s2250_s25 + $0x30] sm:$0xff] %vm239_vm1, %v1113_v9 }
 0x1cb   : > { %v1907_v10 = vpop.f32.mrb[8].mxu1 }
 0x1cc   : > { %1411 = vst.msk [vmem:[%s2250_s25 + $0x48] sm:$0xff] %vm239_vm1, %v1907_v10  ;;  %v1123_v11 = vpop.f32.mrb[9].mxu1 }
 0x1cd   : > { %1410 = vst.msk [vmem:[%s2250_s25 + $0x40] sm:$0xff] %vm239_vm1, %v1123_v11 }
 0x1cf   : > { %v1910_v12 = vpop.f32.mrb[10].mxu1 }
 0x1d0   : > { %1413 = vst.msk [vmem:[%s2250_s25 + $0x58] sm:$0xff] %vm239_vm1, %v1910_v12  ;;  %v1133_v13 = vpop.f32.mrb[11].mxu1 }
 0x1d1   : > { %1412 = vst.msk [vmem:[%s2250_s25 + $0x50] sm:$0xff] %vm239_vm1, %v1133_v13 }
 0x1d3   : > { %v1913_v14 = vpop.f32.mrb[12].mxu1 }
 0x1d4   : > { %1415 = vst.msk [vmem:[%s2250_s25 + $0x68] sm:$0xff] %vm239_vm1, %v1913_v14  ;;  %v1143_v15 = vpop.f32.mrb[13].mxu1 }
 0x1d5   : > { %1414 = vst.msk [vmem:[%s2250_s25 + $0x60] sm:$0xff] %vm239_vm1, %v1143_v15 }
 0x1d7   : > { %v1916_v16 = vpop.f32.mrb[14].mxu1 }
 0x1d8   : > { %1417 = vst.msk [vmem:[%s2250_s25 + $0x78] sm:$0xff] %vm239_vm1, %v1916_v16  ;;  %v1153_v17 = vpop.f32.mrb[15].mxu1 }
 0x1d9   : > { %1416 = vst.msk [vmem:[%s2250_s25 + $0x70] sm:$0xff] %vm239_vm1, %v1153_v17 }
 0x1db   : > { %v1919_v18 = vpop.f32.mrb[16].mxu1 }
 0x1dc   : > { %1419 = vst.msk [vmem:[%s2250_s25 + $0x88] sm:$0xff] %vm239_vm1, %v1919_v18  ;;  %v1163_v19 = vpop.f32.mrb[17].mxu1 }
 0x1dd   : > { %1418 = vst.msk [vmem:[%s2250_s25 + $0x80] sm:$0xff] %vm239_vm1, %v1163_v19 }
 0x1df   : > { %v1922_v20 = vpop.f32.mrb[18].mxu1 }
 0x1e0   : > { %1421 = vst.msk [vmem:[%s2250_s25 + $0x98] sm:$0xff] %vm239_vm1, %v1922_v20  ;;  %v1173_v21 = vpop.f32.mrb[19].mxu1 }
 0x1e1   : > { %1420 = vst.msk [vmem:[%s2250_s25 + $0x90] sm:$0xff] %vm239_vm1, %v1173_v21 }
 0x1e3   : > { %v1925_v22 = vpop.f32.mrb[20].mxu1 }
 0x1e4   : > { %1423 = vst.msk [vmem:[%s2250_s25 + $0xa8] sm:$0xff] %vm239_vm1, %v1925_v22  ;;  %v1183_v23 = vpop.f32.mrb[21].mxu1 }
 0x1e5   : > { %1422 = vst.msk [vmem:[%s2250_s25 + $0xa0] sm:$0xff] %vm239_vm1, %v1183_v23 }
 0x1e7   : > { %v1928_v24 = vpop.f32.mrb[22].mxu1 }
 0x1e8   : > { %1425 = vst.msk [vmem:[%s2250_s25 + $0xb8] sm:$0xff] %vm239_vm1, %v1928_v24  ;;  %v1193_v25 = vpop.f32.mrb[23].mxu1 }
 0x1e9   : > { %1424 = vst.msk [vmem:[%s2250_s25 + $0xb0] sm:$0xff] %vm239_vm1, %v1193_v25 }
 0x1eb   : > { %v1931_v26 = vpop.f32.mrb[24].mxu1 }
 0x1ec   : > { %1427 = vst.msk [vmem:[%s2250_s25 + $0xc8] sm:$0xff] %vm239_vm1, %v1931_v26  ;;  %v1203_v27 = vpop.f32.mrb[25].mxu1 }
 0x1ed   : > { %1426 = vst.msk [vmem:[%s2250_s25 + $0xc0] sm:$0xff] %vm239_vm1, %v1203_v27 }
 0x1ef   : > { %v1934_v28 = vpop.f32.mrb[26].mxu1 }
 0x1f0   : > { %1429 = vst.msk [vmem:[%s2250_s25 + $0xd8] sm:$0xff] %vm239_vm1, %v1934_v28  ;;  %v1213_v29 = vpop.f32.mrb[27].mxu1 }
 0x1f1   : > { %1428 = vst.msk [vmem:[%s2250_s25 + $0xd0] sm:$0xff] %vm239_vm1, %v1213_v29 }
 0x1f3   : > { %v1937_v30 = vpop.f32.mrb[28].mxu1 }
 0x1f4   : > { %1431 = vst.msk [vmem:[%s2250_s25 + $0xe8] sm:$0xff] %vm239_vm1, %v1937_v30  ;;  %v1223_v31 = vpop.f32.mrb[29].mxu1 }
 0x1f5   : > { %1430 = vst.msk [vmem:[%s2250_s25 + $0xe0] sm:$0xff] %vm239_vm1, %v1223_v31 }
 0x1f7   : > { %v1940_v32 = vpop.f32.mrb[30].mxu1 }
 0x1f8   : > { %1433 = vst.msk [vmem:[%s2250_s25 + $0xf8] sm:$0xff] %vm239_vm1, %v1940_v32  ;;  %v1233_v33 = vpop.f32.mrb[31].mxu1 }
 0x1f9   : > { %1432 = vst.msk [vmem:[%s2250_s25 + $0xf0] sm:$0xff] %vm239_vm1, %v1233_v33 }
 0x1fb   : > { %v1943_v34 = vpop.f32.mrb[32].mxu1 }
 0x1fc   : > { %1435 = vst.msk [vmem:[%s2250_s25 + $0x108] sm:$0xff] %vm239_vm1, %v1943_v34  ;;  %v1243_v35 = vpop.f32.mrb[33].mxu1 }
 0x1fd   : > { %1434 = vst.msk [vmem:[%s2250_s25 + $0x100] sm:$0xff] %vm239_vm1, %v1243_v35 }
 0x1ff   : > { %v1946_v36 = vpop.f32.mrb[34].mxu1 }
 0x200   : > { %1437 = vst.msk [vmem:[%s2250_s25 + $0x118] sm:$0xff] %vm239_vm1, %v1946_v36  ;;  %v1253_v37 = vpop.f32.mrb[35].mxu1 }
 0x201   : > { %1436 = vst.msk [vmem:[%s2250_s25 + $0x110] sm:$0xff] %vm239_vm1, %v1253_v37 }
 0x203   : > { %v1949_v38 = vpop.f32.mrb[36].mxu1 }
 0x204   : > { %1439 = vst.msk [vmem:[%s2250_s25 + $0x128] sm:$0xff] %vm239_vm1, %v1949_v38  ;;  %v1263_v39 = vpop.f32.mrb[37].mxu1 }
 0x205   : > { %1438 = vst.msk [vmem:[%s2250_s25 + $0x120] sm:$0xff] %vm239_vm1, %v1263_v39 }
 0x207   : > { %v1952_v40 = vpop.f32.mrb[38].mxu1 }
 0x208   : > { %1441 = vst.msk [vmem:[%s2250_s25 + $0x138] sm:$0xff] %vm239_vm1, %v1952_v40  ;;  %v1273_v41 = vpop.f32.mrb[39].mxu1 }
 0x209   : > { %1440 = vst.msk [vmem:[%s2250_s25 + $0x130] sm:$0xff] %vm239_vm1, %v1273_v41 }
 0x20b   : > { %v1955_v42 = vpop.f32.mrb[40].mxu1 }
 0x20c   : > { %1443 = vst.msk [vmem:[%s2250_s25 + $0x148] sm:$0xff] %vm239_vm1, %v1955_v42  ;;  %v1283_v43 = vpop.f32.mrb[41].mxu1 }
 0x20d   : > { %1442 = vst.msk [vmem:[%s2250_s25 + $0x140] sm:$0xff] %vm239_vm1, %v1283_v43 }
 0x20f   : > { %v1958_v44 = vpop.f32.mrb[42].mxu1 }
 0x210   : > { %1445 = vst.msk [vmem:[%s2250_s25 + $0x158] sm:$0xff] %vm239_vm1, %v1958_v44  ;;  %v1293_v45 = vpop.f32.mrb[43].mxu1 }
 0x211   : > { %1444 = vst.msk [vmem:[%s2250_s25 + $0x150] sm:$0xff] %vm239_vm1, %v1293_v45 }
 0x213   : > { %v1961_v46 = vpop.f32.mrb[44].mxu1 }
 0x214   : > { %1447 = vst.msk [vmem:[%s2250_s25 + $0x168] sm:$0xff] %vm239_vm1, %v1961_v46  ;;  %v1303_v47 = vpop.f32.mrb[45].mxu1 }
 0x215   : > { %1446 = vst.msk [vmem:[%s2250_s25 + $0x160] sm:$0xff] %vm239_vm1, %v1303_v47 }
 0x217   : > { %v1964_v48 = vpop.f32.mrb[46].mxu1 }
 0x218   : > { %1449 = vst.msk [vmem:[%s2250_s25 + $0x178] sm:$0xff] %vm239_vm1, %v1964_v48  ;;  %v1313_v49 = vpop.f32.mrb[47].mxu1 }
 0x219   : > { %1448 = vst.msk [vmem:[%s2250_s25 + $0x170] sm:$0xff] %vm239_vm1, %v1313_v49 }
 0x21b   : > { %v1967_v50 = vpop.f32.mrb[48].mxu1 }
 0x21c   : > { %1451 = vst.msk [vmem:[%s2250_s25 + $0x188] sm:$0xff] %vm239_vm1, %v1967_v50  ;;  %v1323_v51 = vpop.f32.mrb[49].mxu1 }
 0x21d   : > { %1450 = vst.msk [vmem:[%s2250_s25 + $0x180] sm:$0xff] %vm239_vm1, %v1323_v51 }
 0x21f   : > { %v1970_v52 = vpop.f32.mrb[50].mxu1 }
 0x220   : > { %1453 = vst.msk [vmem:[%s2250_s25 + $0x198] sm:$0xff] %vm239_vm1, %v1970_v52  ;;  %v1333_v53 = vpop.f32.mrb[51].mxu1 }
 0x221   : > { %1452 = vst.msk [vmem:[%s2250_s25 + $0x190] sm:$0xff] %vm239_vm1, %v1333_v53 }
 0x223   : > { %v1973_v54 = vpop.f32.mrb[52].mxu1 }
 0x224   : > { %1455 = vst.msk [vmem:[%s2250_s25 + $0x1a8] sm:$0xff] %vm239_vm1, %v1973_v54  ;;  %v1343_v55 = vpop.f32.mrb[53].mxu1 }
 0x225   : > { %1454 = vst.msk [vmem:[%s2250_s25 + $0x1a0] sm:$0xff] %vm239_vm1, %v1343_v55 }
 0x227   : > { %v1976_v56 = vpop.f32.mrb[54].mxu1 }
 0x228   : > { %1457 = vst.msk [vmem:[%s2250_s25 + $0x1b8] sm:$0xff] %vm239_vm1, %v1976_v56  ;;  %v1353_v57 = vpop.f32.mrb[55].mxu1 }
 0x229   : > { %1456 = vst.msk [vmem:[%s2250_s25 + $0x1b0] sm:$0xff] %vm239_vm1, %v1353_v57 }
 0x22b   : > { %v1979_v58 = vpop.f32.mrb[56].mxu1 }
 0x22c   : > { %1459 = vst.msk [vmem:[%s2250_s25 + $0x1c8] sm:$0xff] %vm239_vm1, %v1979_v58  ;;  %v1363_v59 = vpop.f32.mrb[57].mxu1 }
 0x22d   : > { %1458 = vst.msk [vmem:[%s2250_s25 + $0x1c0] sm:$0xff] %vm239_vm1, %v1363_v59 }
 0x22f   : > { %v1982_v60 = vpop.f32.mrb[58].mxu1 }
 0x230   : > { %1461 = vst.msk [vmem:[%s2250_s25 + $0x1d8] sm:$0xff] %vm239_vm1, %v1982_v60  ;;  %v1373_v61 = vpop.f32.mrb[59].mxu1 }
 0x231   : > { %1460 = vst.msk [vmem:[%s2250_s25 + $0x1d0] sm:$0xff] %vm239_vm1, %v1373_v61 }
 0x233   : > { %v1985_v62 = vpop.f32.mrb[60].mxu1 }
 0x234   : > { %1463 = vst.msk [vmem:[%s2250_s25 + $0x1e8] sm:$0xff] %vm239_vm1, %v1985_v62  ;;  %v1383_v63 = vpop.f32.mrb[61].mxu1 }
 0x235   : > { %1462 = vst.msk [vmem:[%s2250_s25 + $0x1e0] sm:$0xff] %vm239_vm1, %v1383_v63 }
 0x237   : > { %v1988_v0 = vpop.f32.mrb[62].mxu1 }
 0x238   : > { %1465 = vst.msk [vmem:[%s2250_s25 + $0x1f8] sm:$0xff] %vm239_vm1, %v1988_v0  ;;  %v1393_v1 = vpop.f32.mrb[63].mxu1 }
 0x239   : > { %1464 = vst.msk [vmem:[%s2250_s25 + $0x1f0] sm:$0xff] %vm239_vm1, %v1393_v1 }
 0x23a PF: > { %s13_s12 = sadd.s32 1, %s2003_s12  }
 0x23b   : > { %p10_p4 = scmp.ge.s32.totalorder %s13_s12, 4  }
 0x23d   :  { %12 = sbr.rel (!%p10_p4) target bundleno = 1 (0x1), region = 62 }

// kernel: tpu_custom_call.1
= control target key start
LH: loop header
LB: loop body
LE: loop exit
PB: predicated region body
PF: predicated region fallthrough
CT: control target
= control target key end

     0   :  { %s2025_s12 = smov 0   ;;  %s2383_s0 = inlined_call_operand.vmem [shape: f32[1024,4], index: 0, kind: input, shape index: {}]   ;;  %s2384_s1 = inlined_call_operand.vmem [shape: f32[4,4], index: 1, kind: input, shape index: {}]   ;;  %s2385_s2 = inlined_call_operand.vmem [shape: f32[4,4], index: 2, kind: input, shape index: {}]   ;;  %s2386_s3 = inlined_call_operand.vmem [shape: f32[1024,4], index: 3, kind: output, shape index: {}]  }
   0x1 LB: > { %s1522_s13 = sadd.s32 4294967295, %s2003_s12   ;;  %p1526_p0 = scmp.ge.s32.totalorder %s2003_s12, 1  ;;  %s2003_s12 = sphi %s2025_s12, %s13_s12  }
   0x2   : > { %p138_p1 = scmp.lt.s32.totalorder %s2003_s12, 3 }
   0x4   : > { %p139_p2 = pnand %p1526_p0, %p138_p1 }
   0x5   : > { %v238_v0 = vld [vmem:[%s2384_s1] sm:$0xf] (!%p139_p2)  ;;  %vm432_vm0 = vcmask (!%p139_p2), 1043456   ;;  %s1527_s16 = sshll.u32 (!%p139_p2), %s1522_s13, 6  ;;  %vm239_vm1 = vcmask (!%p139_p2), 31744  }
   0x6   : > { %142 = sbr.rel (%p139_p2) target bundleno = 570 (0x23a), region = 32  ;;  %1793 = vmatprep.subr.msk.mxu0 (!%p139_p2), %vm432_vm0, %v238_v0  ;;  %p163_p3 = scmp.lt.s32.totalorder (!%p139_p2), %s1527_s16, 127  ;;  %v821_v46 = vld [vmem:[%s2385_s2] sm:$0xf] (!%p139_p2) }
   0x7   : > { %1794 = vmatpush3.msk.msra.mxu0 (!%p139_p2), %vm432_vm0, %v238_v0  ;;  %1891 = vmatprep.subr.msk.mxu1 (!%p139_p2), %vm432_vm0, %v821_v46 }
   0x8   : > { %1892 = vmatpush3.msk.msra.mxu1 (!%p139_p2), %vm432_vm0, %v821_v46 }
   0xd   : > { %s2388_s16 = smov (!%p163_p3, %s1527_s16), 127 }
   0xe   : > { %s1528_s17 = sshll.u32 %s2388_s16, 3 }
   0xf   : > { %s2046_s20 = scalar_lea.vmem %s2383_s0, %s1528_s17  ;;  %s2250_s25 = scalar_lea.vmem %s2386_s3, %s1528_s17 }
  0x10   : > { %v174_v1 = vld [vmem:[%s2046_s20] sm:$0xff]  ;;  %v175_v2 = vld [vmem:[%s2046_s20 + $0x8] sm:$0xff]  ;;  %v176_v3 = vld [vmem:[%s2046_s20 + $0x10] sm:$0xff] }
  0x11   : > { %1795 = vmatprep.mubr.msk.f32.mxu0 %vm239_vm1, %v174_v1  ;;  %v177_v4 = vld [vmem:[%s2046_s20 + $0x18] sm:$0xff]  ;;  %v178_v5 = vld [vmem:[%s2046_s20 + $0x20] sm:$0xff]  ;;  %v179_v6 = vld [vmem:[%s2046_s20 + $0x28] sm:$0xff] }
  0x12   : > { %1796 = vmatmul.mubr.msk.f32.vlgmr.msra.gmra.mrb[0].mxu0 %vm239_vm1, %v175_v2  ;;  %v180_v7 = vld [vmem:[%s2046_s20 + $0x30] sm:$0xff]  ;;  %v181_v8 = vld [vmem:[%s2046_s20 + $0x38] sm:$0xff]  ;;  %v182_v9 = vld [vmem:[%s2046_s20 + $0x40] sm:$0xff] }
  0x13   : > { %1798 = vmatprep.mubr.msk.f32.mxu0 %vm239_vm1, %v176_v3  ;;  %v183_v10 = vld [vmem:[%s2046_s20 + $0x48] sm:$0xff]  ;;  %v184_v11 = vld [vmem:[%s2046_s20 + $0x50] sm:$0xff]  ;;  %v185_v12 = vld [vmem:[%s2046_s20 + $0x58] sm:$0xff] }
  0x14   : > { %v186_v13 = vld [vmem:[%s2046_s20 + $0x60] sm:$0xff]  ;;  %v187_v14 = vld [vmem:[%s2046_s20 + $0x68] sm:$0xff]  ;;  %v188_v15 = vld [vmem:[%s2046_s20 + $0x70] sm:$0xff] }
  0x15   : > { %v189_v16 = vld [vmem:[%s2046_s20 + $0x78] sm:$0xff]  ;;  %v190_v17 = vld [vmem:[%s2046_s20 + $0x80] sm:$0xff]  ;;  %v191_v18 = vld [vmem:[%s2046_s20 + $0x88] sm:$0xff] }
  0x16   : > { %1799 = vmatmul.mubr.msk.f32.gmra.mrb[2].mxu0 %vm239_vm1, %v177_v4  ;;  %v192_v19 = vld [vmem:[%s2046_s20 + $0x90] sm:$0xff]  ;;  %v193_v20 = vld [vmem:[%s2046_s20 + $0x98] sm:$0xff]  ;;  %v194_v21 = vld [vmem:[%s2046_s20 + $0xa0] sm:$0xff] }
  0x17   : > { %1801 = vmatprep.mubr.msk.f32.mxu0 %vm239_vm1, %v178_v5  ;;  %v195_v22 = vld [vmem:[%s2046_s20 + $0xa8] sm:$0xff]  ;;  %v196_v23 = vld [vmem:[%s2046_s20 + $0xb0] sm:$0xff]  ;;  %v197_v24 = vld [vmem:[%s2046_s20 + $0xb8] sm:$0xff] }
  0x18   : > { %v198_v25 = vld [vmem:[%s2046_s20 + $0xc0] sm:$0xff]  ;;  %v199_v26 = vld [vmem:[%s2046_s20 + $0xc8] sm:$0xff]  ;;  %v200_v27 = vld [vmem:[%s2046_s20 + $0xd0] sm:$0xff] }
  0x19   : > { %v201_v28 = vld [vmem:[%s2046_s20 + $0xd8] sm:$0xff]  ;;  %v202_v29 = vld [vmem:[%s2046_s20 + $0xe0] sm:$0xff]  ;;  %v203_v30 = vld [vmem:[%s2046_s20 + $0xe8] sm:$0xff] }
  0x1a   : > { %1802 = vmatmul.mubr.msk.f32.gmra.mrb[4].mxu0 %vm239_vm1, %v179_v6  ;;  %v204_v31 = vld [vmem:[%s2046_s20 + $0xf0] sm:$0xff]  ;;  %v205_v32 = vld [vmem:[%s2046_s20 + $0xf8] sm:$0xff]  ;;  %v206_v33 = vld [vmem:[%s2046_s20 + $0x100] sm:$0xff] }
  0x1b   : > { %1804 = vmatprep.mubr.msk.f32.mxu0 %vm239_vm1, %v180_v7  ;;  %v207_v34 = vld [vmem:[%s2046_s20 + $0x108] sm:$0xff]  ;;  %v208_v35 = vld [vmem:[%s2046_s20 + $0x110] sm:$0xff]  ;;  %v209_v36 = vld [vmem:[%s2046_s20 + $0x118] sm:$0xff] }
  0x1c   : > { %v210_v37 = vld [vmem:[%s2046_s20 + $0x120] sm:$0xff]  ;;  %v211_v38 = vld [vmem:[%s2046_s20 + $0x128] sm:$0xff]  ;;  %v212_v39 = vld [vmem:[%s2046_s20 + $0x130] sm:$0xff] }
  0x1d   : > { %v213_v40 = vld [vmem:[%s2046_s20 + $0x138] sm:$0xff]  ;;  %v214_v41 = vld [vmem:[%s2046_s20 + $0x140] sm:$0xff]  ;;  %v215_v42 = vld [vmem:[%s2046_s20 + $0x148] sm:$0xff] }
  0x1e   : > { %1805 = vmatmul.mubr.msk.f32.gmra.mrb[6].mxu0 %vm239_vm1, %v181_v8  ;;  %v216_v43 = vld [vmem:[%s2046_s20 + $0x150] sm:$0xff]  ;;  %v217_v44 = vld [vmem:[%s2046_s20 + $0x158] sm:$0xff]  ;;  %v218_v45 = vld [vmem:[%s2046_s20 + $0x160] sm:$0xff] }
  0x1f   : > { %1807 = vmatprep.mubr.msk.f32.mxu0 %vm239_vm1, %v182_v9  ;;  %v219_v47 = vld [vmem:[%s2046_s20 + $0x168] sm:$0xff]  ;;  %v220_v48 = vld [vmem:[%s2046_s20 + $0x170] sm:$0xff]  ;;  %v221_v49 = vld [vmem:[%s2046_s20 + $0x178] sm:$0xff] }
  0x20   : > { %v222_v50 = vld [vmem:[%s2046_s20 + $0x180] sm:$0xff]  ;;  %v223_v51 = vld [vmem:[%s2046_s20 + $0x188] sm:$0xff]  ;;  %v224_v52 = vld [vmem:[%s2046_s20 + $0x190] sm:$0xff] }
  0x21   : > { %v225_v53 = vld [vmem:[%s2046_s20 + $0x198] sm:$0xff]  ;;  %v226_v54 = vld [vmem:[%s2046_s20 + $0x1a0] sm:$0xff]  ;;  %v227_v55 = vld [vmem:[%s2046_s20 + $0x1a8] sm:$0xff] }
  0x22   : > { %1808 = vmatmul.mubr.msk.f32.gmra.mrb[8].mxu0 %vm239_vm1, %v183_v10  ;;  %v228_v56 = vld [vmem:[%s2046_s20 + $0x1b0] sm:$0xff]  ;;  %v229_v57 = vld [vmem:[%s2046_s20 + $0x1b8] sm:$0xff]  ;;  %v230_v58 = vld [vmem:[%s2046_s20 + $0x1c0] sm:$0xff] }
  0x23   : > { %1810 = vmatprep.mubr.msk.f32.mxu0 %vm239_vm1, %v184_v11  ;;  %v231_v59 = vld [vmem:[%s2046_s20 + $0x1c8] sm:$0xff]  ;;  %v232_v60 = vld [vmem:[%s2046_s20 + $0x1d0] sm:$0xff]  ;;  %v233_v61 = vld [vmem:[%s2046_s20 + $0x1d8] sm:$0xff] }
  0x24   : > { %v234_v62 = vld [vmem:[%s2046_s20 + $0x1e0] sm:$0xff]  ;;  %v235_v63 = vld [vmem:[%s2046_s20 + $0x1e8] sm:$0xff]  ;;  %v236_v0 = vld [vmem:[%s2046_s20 + $0x1f0] sm:$0xff] }
  0x25   : > { %v237_v1 = vld [vmem:[%s2046_s20 + $0x1f8] sm:$0xff] }
  0x26   : > { %1811 = vmatmul.mubr.msk.f32.gmra.mrb[10].mxu0 %vm239_vm1, %v185_v12 }
  0x27   : > { %1813 = vmatprep.mubr.msk.f32.mxu0 %vm239_vm1, %v186_v13 }
  0x2a   : > { %1814 = vmatmul.mubr.msk.f32.gmra.mrb[12].mxu0 %vm239_vm1, %v187_v14 }
  0x2b   : > { %1816 = vmatprep.mubr.msk.f32.mxu0 %vm239_vm1, %v188_v15 }
  0x2e   : > { %1817 = vmatmul.mubr.msk.f32.gmra.mrb[14].mxu0 %vm239_vm1, %v189_v16 }
  0x2f   : > { %1819 = vmatprep.mubr.msk.f32.mxu0 %vm239_vm1, %v190_v17 }
  0x32   : > { %1820 = vmatmul.mubr.msk.f32.gmra.mrb[16].mxu0 %vm239_vm1, %v191_v18 }
  0x33   : > { %1822 = vmatprep.mubr.msk.f32.mxu0 %vm239_vm1, %v192_v19 }
  0x36   : > { %1823 = vmatmul.mubr.msk.f32.gmra.mrb[18].mxu0 %vm239_vm1, %v193_v20 }
  0x37   : > { %1825 = vmatprep.mubr.msk.f32.mxu0 %vm239_vm1, %v194_v21 }
  0x3a   : > { %1826 = vmatmul.mubr.msk.f32.gmra.mrb[20].mxu0 %vm239_vm1, %v195_v22 }
  0x3b   : > { %1828 = vmatprep.mubr.msk.f32.mxu0 %vm239_vm1, %v196_v23 }
  0x3e   : > { %1829 = vmatmul.mubr.msk.f32.gmra.mrb[22].mxu0 %vm239_vm1, %v197_v24 }
  0x3f   : > { %1831 = vmatprep.mubr.msk.f32.mxu0 %vm239_vm1, %v198_v25 }
  0x42   : > { %1832 = vmatmul.mubr.msk.f32.gmra.mrb[24].mxu0 %vm239_vm1, %v199_v26 }
  0x43   : > { %1834 = vmatprep.mubr.msk.f32.mxu0 %vm239_vm1, %v200_v27 }
  0x46   : > { %1835 = vmatmul.mubr.msk.f32.gmra.mrb[26].mxu0 %vm239_vm1, %v201_v28 }
  0x47   : > { %1837 = vmatprep.mubr.msk.f32.mxu0 %vm239_vm1, %v202_v29 }
  0x4a   : > { %1838 = vmatmul.mubr.msk.f32.gmra.mrb[28].mxu0 %vm239_vm1, %v203_v30 }
  0x4b   : > { %1840 = vmatprep.mubr.msk.f32.mxu0 %vm239_vm1, %v204_v31 }
  0x4e   : > { %1841 = vmatmul.mubr.msk.f32.gmra.mrb[30].mxu0 %vm239_vm1, %v205_v32 }
  0x4f   : > { %1843 = vmatprep.mubr.msk.f32.mxu0 %vm239_vm1, %v206_v33 }
  0x52   : > { %1844 = vmatmul.mubr.msk.f32.gmra.mrb[32].mxu0 %vm239_vm1, %v207_v34 }
  0x53   : > { %1846 = vmatprep.mubr.msk.f32.mxu0 %vm239_vm1, %v208_v35 }
  0x56   : > { %1847 = vmatmul.mubr.msk.f32.gmra.mrb[34].mxu0 %vm239_vm1, %v209_v36 }
  0x57   : > { %1849 = vmatprep.mubr.msk.f32.mxu0 %vm239_vm1, %v210_v37 }
  0x5a   : > { %1850 = vmatmul.mubr.msk.f32.gmra.mrb[36].mxu0 %vm239_vm1, %v211_v38 }
  0x5b   : > { %1852 = vmatprep.mubr.msk.f32.mxu0 %vm239_vm1, %v212_v39 }
  0x5e   : > { %1853 = vmatmul.mubr.msk.f32.gmra.mrb[38].mxu0 %vm239_vm1, %v213_v40 }
  0x5f   : > { %1855 = vmatprep.mubr.msk.f32.mxu0 %vm239_vm1, %v214_v41 }
  0x62   : > { %1856 = vmatmul.mubr.msk.f32.gmra.mrb[40].mxu0 %vm239_vm1, %v215_v42 }
  0x63   : > { %1858 = vmatprep.mubr.msk.f32.mxu0 %vm239_vm1, %v216_v43 }
  0x66   : > { %1859 = vmatmul.mubr.msk.f32.gmra.mrb[42].mxu0 %vm239_vm1, %v217_v44 }
  0x67   : > { %1861 = vmatprep.mubr.msk.f32.mxu0 %vm239_vm1, %v218_v45 }
  0x6a   : > { %1862 = vmatmul.mubr.msk.f32.gmra.mrb[44].mxu0 %vm239_vm1, %v219_v47 }
  0x6b   : > { %1864 = vmatprep.mubr.msk.f32.mxu0 %vm239_vm1, %v220_v48 }
  0x6e   : > { %1865 = vmatmul.mubr.msk.f32.gmra.mrb[46].mxu0 %vm239_vm1, %v221_v49 }
  0x6f   : > { %1867 = vmatprep.mubr.msk.f32.mxu0 %vm239_vm1, %v222_v50 }
  0x72   : > { %1868 = vmatmul.mubr.msk.f32.gmra.mrb[48].mxu0 %vm239_vm1, %v223_v51 }
  0x73   : > { %1870 = vmatprep.mubr.msk.f32.mxu0 %vm239_vm1, %v224_v52 }
  0x76   : > { %1871 = vmatmul.mubr.msk.f32.gmra.mrb[50].mxu0 %vm239_vm1, %v225_v53 }
  0x77   : > { %1873 = vmatprep.mubr.msk.f32.mxu0 %vm239_vm1, %v226_v54 }
  0x7a   : > { %1874 = vmatmul.mubr.msk.f32.gmra.mrb[52].mxu0 %vm239_vm1, %v227_v55 }
  0x7b   : > { %1876 = vmatprep.mubr.msk.f32.mxu0 %vm239_vm1, %v228_v56 }
  0x7e   : > { %1877 = vmatmul.mubr.msk.f32.gmra.mrb[54].mxu0 %vm239_vm1, %v229_v57 }
  0x7f   : > { %1879 = vmatprep.mubr.msk.f32.mxu0 %vm239_vm1, %v230_v58 }
  0x82   : > { %1880 = vmatmul.mubr.msk.f32.gmra.mrb[56].mxu0 %vm239_vm1, %v231_v59 }
  0x83   : > { %1882 = vmatprep.mubr.msk.f32.mxu0 %vm239_vm1, %v232_v60 }
  0x86   : > { %1883 = vmatmul.mubr.msk.f32.gmra.mrb[58].mxu0 %vm239_vm1, %v233_v61 }
  0x87   : > { %1885 = vmatprep.mubr.msk.f32.mxu0 %vm239_vm1, %v234_v62 }
  0x8a   : > { %1886 = vmatmul.mubr.msk.f32.gmra.mrb[60].mxu0 %vm239_vm1, %v235_v63 }
  0x8b   : > { %1888 = vmatprep.mubr.msk.f32.mxu0 %vm239_vm1, %v236_v0 }
  0x8e   : > { %1889 = vmatmul.mubr.msk.f32.gmra.mrb[62].mxu0 %vm239_vm1, %v237_v1 }
  0xe5   : > { %v1797_v2 = vpop.f32.mrb[0].mxu0 }
  0xe6   : > { %v502_v3 = vpop.f32.mrb[1].mxu0 }
  0xe7   : > { %1893 = vmatprep.mubr.msk.f32.mxu1 %vm239_vm1, %v502_v3 }
  0xe8   : > { %1894 = vmatmul.mubr.msk.f32.vlgmr.msra.gmra.mrb[0].mxu1 %vm239_vm1, %v1797_v2 }
  0xe9   : > { %v1800_v4 = vpop.f32.mrb[2].mxu0 }
  0xea   : > { %v512_v5 = vpop.f32.mrb[3].mxu0 }
  0xeb   : > { %1896 = vmatprep.mubr.msk.f32.mxu1 %vm239_vm1, %v512_v5 }
  0xec   : > { %1897 = vmatmul.mubr.msk.f32.gmra.mrb[2].mxu1 %vm239_vm1, %v1800_v4 }
  0xed   : > { %v1803_v6 = vpop.f32.mrb[4].mxu0 }
  0xee   : > { %v522_v7 = vpop.f32.mrb[5].mxu0 }
  0xef   : > { %1899 = vmatprep.mubr.msk.f32.mxu1 %vm239_vm1, %v522_v7 }
  0xf0   : > { %1900 = vmatmul.mubr.msk.f32.gmra.mrb[4].mxu1 %vm239_vm1, %v1803_v6 }
  0xf1   : > { %v1806_v8 = vpop.f32.mrb[6].mxu0 }
  0xf2   : > { %v532_v9 = vpop.f32.mrb[7].mxu0 }
  0xf3   : > { %1902 = vmatprep.mubr.msk.f32.mxu1 %vm239_vm1, %v532_v9 }
  0xf4   : > { %1903 = vmatmul.mubr.msk.f32.gmra.mrb[6].mxu1 %vm239_vm1, %v1806_v8 }
  0xf5   : > { %v1809_v10 = vpop.f32.mrb[8].mxu0 }
  0xf6   : > { %v542_v11 = vpop.f32.mrb[9].mxu0 }
  0xf7   : > { %1905 = vmatprep.mubr.msk.f32.mxu1 %vm239_vm1, %v542_v11 }
  0xf8   : > { %1906 = vmatmul.mubr.msk.f32.gmra.mrb[8].mxu1 %vm239_vm1, %v1809_v10 }
  0xf9   : > { %v1812_v12 = vpop.f32.mrb[10].mxu0 }
  0xfa   : > { %v552_v13 = vpop.f32.mrb[11].mxu0 }
  0xfb   : > { %1908 = vmatprep.mubr.msk.f32.mxu1 %vm239_vm1, %v552_v13 }
  0xfc   : > { %1909 = vmatmul.mubr.msk.f32.gmra.mrb[10].mxu1 %vm239_vm1, %v1812_v12 }
  0xfd   : > { %v1815_v14 = vpop.f32.mrb[12].mxu0 }
  0xfe   : > { %v562_v15 = vpop.f32.mrb[13].mxu0 }
  0xff   : > { %1911 = vmatprep.mubr.msk.f32.mxu1 %vm239_vm1, %v562_v15 }
 0x100   : > { %1912 = vmatmul.mubr.msk.f32.gmra.mrb[12].mxu1 %vm239_vm1, %v1815_v14 }
 0x101   : > { %v1818_v16 = vpop.f32.mrb[14].mxu0 }
 0x102   : > { %v572_v17 = vpop.f32.mrb[15].mxu0 }
 0x103   : > { %1914 = vmatprep.mubr.msk.f32.mxu1 %vm239_vm1, %v572_v17 }
 0x104   : > { %1915 = vmatmul.mubr.msk.f32.gmra.mrb[14].mxu1 %vm239_vm1, %v1818_v16 }
 0x105   : > { %v1821_v18 = vpop.f32.mrb[16].mxu0 }
 0x106   : > { %v582_v19 = vpop.f32.mrb[17].mxu0 }
 0x107   : > { %1917 = vmatprep.mubr.msk.f32.mxu1 %vm239_vm1, %v582_v19 }
 0x108   : > { %1918 = vmatmul.mubr.msk.f32.gmra.mrb[16].mxu1 %vm239_vm1, %v1821_v18 }
 0x109   : > { %v1824_v20 = vpop.f32.mrb[18].mxu0 }
 0x10a   : > { %v592_v21 = vpop.f32.mrb[19].mxu0 }
 0x10b   : > { %1920 = vmatprep.mubr.msk.f32.mxu1 %vm239_vm1, %v592_v21 }
 0x10c   : > { %1921 = vmatmul.mubr.msk.f32.gmra.mrb[18].mxu1 %vm239_vm1, %v1824_v20 }
 0x10d   : > { %v1827_v22 = vpop.f32.mrb[20].mxu0 }
 0x10e   : > { %v602_v23 = vpop.f32.mrb[21].mxu0 }
 0x10f   : > { %1923 = vmatprep.mubr.msk.f32.mxu1 %vm239_vm1, %v602_v23 }
 0x110   : > { %1924 = vmatmul.mubr.msk.f32.gmra.mrb[20].mxu1 %vm239_vm1, %v1827_v22 }
 0x111   : > { %v1830_v24 = vpop.f32.mrb[22].mxu0 }
 0x112   : > { %v612_v25 = vpop.f32.mrb[23].mxu0 }
 0x113   : > { %1926 = vmatprep.mubr.msk.f32.mxu1 %vm239_vm1, %v612_v25 }
 0x114   : > { %1927 = vmatmul.mubr.msk.f32.gmra.mrb[22].mxu1 %vm239_vm1, %v1830_v24 }
 0x115   : > { %v1833_v26 = vpop.f32.mrb[24].mxu0 }
 0x116   : > { %v622_v27 = vpop.f32.mrb[25].mxu0 }
 0x117   : > { %1929 = vmatprep.mubr.msk.f32.mxu1 %vm239_vm1, %v622_v27 }
 0x118   : > { %1930 = vmatmul.mubr.msk.f32.gmra.mrb[24].mxu1 %vm239_vm1, %v1833_v26 }
 0x119   : > { %v1836_v28 = vpop.f32.mrb[26].mxu0 }
 0x11a   : > { %v632_v29 = vpop.f32.mrb[27].mxu0 }
 0x11b   : > { %1932 = vmatprep.mubr.msk.f32.mxu1 %vm239_vm1, %v632_v29 }
 0x11c   : > { %1933 = vmatmul.mubr.msk.f32.gmra.mrb[26].mxu1 %vm239_vm1, %v1836_v28 }
 0x11d   : > { %v1839_v30 = vpop.f32.mrb[28].mxu0 }
 0x11e   : > { %v642_v31 = vpop.f32.mrb[29].mxu0 }
 0x11f   : > { %1935 = vmatprep.mubr.msk.f32.mxu1 %vm239_vm1, %v642_v31 }
 0x120   : > { %1936 = vmatmul.mubr.msk.f32.gmra.mrb[28].mxu1 %vm239_vm1, %v1839_v30 }
 0x121   : > { %v1842_v32 = vpop.f32.mrb[30].mxu0 }
 0x122   : > { %v652_v33 = vpop.f32.mrb[31].mxu0 }
 0x123   : > { %1938 = vmatprep.mubr.msk.f32.mxu1 %vm239_vm1, %v652_v33 }
 0x124   : > { %1939 = vmatmul.mubr.msk.f32.gmra.mrb[30].mxu1 %vm239_vm1, %v1842_v32 }
 0x125   : > { %v1845_v34 = vpop.f32.mrb[32].mxu0 }
 0x126   : > { %v662_v35 = vpop.f32.mrb[33].mxu0 }
 0x127   : > { %1941 = vmatprep.mubr.msk.f32.mxu1 %vm239_vm1, %v662_v35 }
 0x128   : > { %1942 = vmatmul.mubr.msk.f32.gmra.mrb[32].mxu1 %vm239_vm1, %v1845_v34 }
 0x129   : > { %v1848_v36 = vpop.f32.mrb[34].mxu0 }
 0x12a   : > { %v672_v37 = vpop.f32.mrb[35].mxu0 }
 0x12b   : > { %1944 = vmatprep.mubr.msk.f32.mxu1 %vm239_vm1, %v672_v37 }
 0x12c   : > { %1945 = vmatmul.mubr.msk.f32.gmra.mrb[34].mxu1 %vm239_vm1, %v1848_v36 }
 0x12d   : > { %v1851_v38 = vpop.f32.mrb[36].mxu0 }
 0x12e   : > { %v682_v39 = vpop.f32.mrb[37].mxu0 }
 0x12f   : > { %1947 = vmatprep.mubr.msk.f32.mxu1 %vm239_vm1, %v682_v39 }
 0x130   : > { %1948 = vmatmul.mubr.msk.f32.gmra.mrb[36].mxu1 %vm239_vm1, %v1851_v38 }
 0x131   : > { %v1854_v40 = vpop.f32.mrb[38].mxu0 }
 0x132   : > { %v692_v41 = vpop.f32.mrb[39].mxu0 }
 0x133   : > { %1950 = vmatprep.mubr.msk.f32.mxu1 %vm239_vm1, %v692_v41 }
 0x134   : > { %1951 = vmatmul.mubr.msk.f32.gmra.mrb[38].mxu1 %vm239_vm1, %v1854_v40 }
 0x135   : > { %v1857_v42 = vpop.f32.mrb[40].mxu0 }
 0x136   : > { %v702_v43 = vpop.f32.mrb[41].mxu0 }
 0x137   : > { %1953 = vmatprep.mubr.msk.f32.mxu1 %vm239_vm1, %v702_v43 }
 0x138   : > { %1954 = vmatmul.mubr.msk.f32.gmra.mrb[40].mxu1 %vm239_vm1, %v1857_v42 }
 0x139   : > { %v1860_v44 = vpop.f32.mrb[42].mxu0 }
 0x13a   : > { %v712_v45 = vpop.f32.mrb[43].mxu0 }
 0x13b   : > { %1956 = vmatprep.mubr.msk.f32.mxu1 %vm239_vm1, %v712_v45 }
 0x13c   : > { %1957 = vmatmul.mubr.msk.f32.gmra.mrb[42].mxu1 %vm239_vm1, %v1860_v44 }
 0x13d   : > { %v1863_v46 = vpop.f32.mrb[44].mxu0 }
 0x13e   : > { %v722_v47 = vpop.f32.mrb[45].mxu0 }
 0x13f   : > { %1959 = vmatprep.mubr.msk.f32.mxu1 %vm239_vm1, %v722_v47 }
 0x140   : > { %1960 = vmatmul.mubr.msk.f32.gmra.mrb[44].mxu1 %vm239_vm1, %v1863_v46 }
 0x141   : > { %v1866_v48 = vpop.f32.mrb[46].mxu0 }
 0x142   : > { %v732_v49 = vpop.f32.mrb[47].mxu0 }
 0x143   : > { %1962 = vmatprep.mubr.msk.f32.mxu1 %vm239_vm1, %v732_v49 }
 0x144   : > { %1963 = vmatmul.mubr.msk.f32.gmra.mrb[46].mxu1 %vm239_vm1, %v1866_v48 }
 0x145   : > { %v1869_v50 = vpop.f32.mrb[48].mxu0 }
 0x146   : > { %v742_v51 = vpop.f32.mrb[49].mxu0 }
 0x147   : > { %1965 = vmatprep.mubr.msk.f32.mxu1 %vm239_vm1, %v742_v51 }
 0x148   : > { %1966 = vmatmul.mubr.msk.f32.gmra.mrb[48].mxu1 %vm239_vm1, %v1869_v50 }
 0x149   : > { %v1872_v52 = vpop.f32.mrb[50].mxu0 }
 0x14a   : > { %v752_v53 = vpop.f32.mrb[51].mxu0 }
 0x14b   : > { %1968 = vmatprep.mubr.msk.f32.mxu1 %vm239_vm1, %v752_v53 }
 0x14c   : > { %1969 = vmatmul.mubr.msk.f32.gmra.mrb[50].mxu1 %vm239_vm1, %v1872_v52 }
 0x14d   : > { %v1875_v54 = vpop.f32.mrb[52].mxu0 }
 0x14e   : > { %v762_v55 = vpop.f32.mrb[53].mxu0 }
 0x14f   : > { %1971 = vmatprep.mubr.msk.f32.mxu1 %vm239_vm1, %v762_v55 }
 0x150   : > { %1972 = vmatmul.mubr.msk.f32.gmra.mrb[52].mxu1 %vm239_vm1, %v1875_v54 }
 0x151   : > { %v1878_v56 = vpop.f32.mrb[54].mxu0 }
 0x152   : > { %v772_v57 = vpop.f32.mrb[55].mxu0 }
 0x153   : > { %1974 = vmatprep.mubr.msk.f32.mxu1 %vm239_vm1, %v772_v57 }
 0x154   : > { %1975 = vmatmul.mubr.msk.f32.gmra.mrb[54].mxu1 %vm239_vm1, %v1878_v56 }
 0x155   : > { %v1881_v58 = vpop.f32.mrb[56].mxu0 }
 0x156   : > { %v782_v59 = vpop.f32.mrb[57].mxu0 }
 0x157   : > { %1977 = vmatprep.mubr.msk.f32.mxu1 %vm239_vm1, %v782_v59 }
 0x158   : > { %1978 = vmatmul.mubr.msk.f32.gmra.mrb[56].mxu1 %vm239_vm1, %v1881_v58 }
 0x159   : > { %v1884_v60 = vpop.f32.mrb[58].mxu0 }
 0x15a   : > { %v792_v61 = vpop.f32.mrb[59].mxu0 }
 0x15b   : > { %1980 = vmatprep.mubr.msk.f32.mxu1 %vm239_vm1, %v792_v61 }
 0x15c   : > { %1981 = vmatmul.mubr.msk.f32.gmra.mrb[58].mxu1 %vm239_vm1, %v1884_v60 }
 0x15d   : > { %v1887_v62 = vpop.f32.mrb[60].mxu0 }
 0x15e   : > { %v802_v63 = vpop.f32.mrb[61].mxu0 }
 0x15f   : > { %1983 = vmatprep.mubr.msk.f32.mxu1 %vm239_vm1, %v802_v63 }
 0x160   : > { %1984 = vmatmul.mubr.msk.f32.gmra.mrb[60].mxu1 %vm239_vm1, %v1887_v62 }
 0x161   : > { %v1890_v0 = vpop.f32.mrb[62].mxu0 }
 0x162   : > { %v812_v1 = vpop.f32.mrb[63].mxu0 }
 0x163   : > { %1986 = vmatprep.mubr.msk.f32.mxu1 %vm239_vm1, %v812_v1 }
 0x164   : > { %1987 = vmatmul.mubr.msk.f32.gmra.mrb[62].mxu1 %vm239_vm1, %v1890_v0 }
 0x1bb   : > { %v1895_v2 = vpop.f32.mrb[0].mxu1 }
 0x1bc   : > { %1403 = vst.msk [vmem:[%s2250_s25 + $0x8] sm:$0xff] %vm239_vm1, %v1895_v2  ;;  %v1083_v3 = vpop.f32.mrb[1].mxu1 }
 0x1bd   : > { %1402 = vst.msk [vmem:[%s2250_s25] sm:$0xff] %vm239_vm1, %v1083_v3 }
 0x1bf   : > { %v1898_v4 = vpop.f32.mrb[2].mxu1 }
 0x1c0   : > { %1405 = vst.msk [vmem:[%s2250_s25 + $0x18] sm:$0xff] %vm239_vm1, %v1898_v4  ;;  %v1093_v5 = vpop.f32.mrb[3].mxu1 }
 0x1c1   : > { %1404 = vst.msk [vmem:[%s2250_s25 + $0x10] sm:$0xff] %vm239_vm1, %v1093_v5 }
 0x1c3   : > { %v1901_v6 = vpop.f32.mrb[4].mxu1 }
 0x1c4   : > { %1407 = vst.msk [vmem:[%s2250_s25 + $0x28] sm:$0xff] %vm239_vm1, %v1901_v6  ;;  %v1103_v7 = vpop.f32.mrb[5].mxu1 }
 0x1c5   : > { %1406 = vst.msk [vmem:[%s2250_s25 + $0x20] sm:$0xff] %vm239_vm1, %v1103_v7 }
 0x1c7   : > { %v1904_v8 = vpop.f32.mrb[6].mxu1 }
 0x1c8   : > { %1409 = vst.msk [vmem:[%s2250_s25 + $0x38] sm:$0xff] %vm239_vm1, %v1904_v8  ;;  %v1113_v9 = vpop.f32.mrb[7].mxu1 }
 0x1c9   : > { %1408 = vst.msk [vmem:[%s2250_s25 + $0x30] sm:$0xff] %vm239_vm1, %v1113_v9 }
 0x1cb   : > { %v1907_v10 = vpop.f32.mrb[8].mxu1 }
 0x1cc   : > { %1411 = vst.msk [vmem:[%s2250_s25 + $0x48] sm:$0xff] %vm239_vm1, %v1907_v10  ;;  %v1123_v11 = vpop.f32.mrb[9].mxu1 }
 0x1cd   : > { %1410 = vst.msk [vmem:[%s2250_s25 + $0x40] sm:$0xff] %vm239_vm1, %v1123_v11 }
 0x1cf   : > { %v1910_v12 = vpop.f32.mrb[10].mxu1 }
 0x1d0   : > { %1413 = vst.msk [vmem:[%s2250_s25 + $0x58] sm:$0xff] %vm239_vm1, %v1910_v12  ;;  %v1133_v13 = vpop.f32.mrb[11].mxu1 }
 0x1d1   : > { %1412 = vst.msk [vmem:[%s2250_s25 + $0x50] sm:$0xff] %vm239_vm1, %v1133_v13 }
 0x1d3   : > { %v1913_v14 = vpop.f32.mrb[12].mxu1 }
 0x1d4   : > { %1415 = vst.msk [vmem:[%s2250_s25 + $0x68] sm:$0xff] %vm239_vm1, %v1913_v14  ;;  %v1143_v15 = vpop.f32.mrb[13].mxu1 }
 0x1d5   : > { %1414 = vst.msk [vmem:[%s2250_s25 + $0x60] sm:$0xff] %vm239_vm1, %v1143_v15 }
 0x1d7   : > { %v1916_v16 = vpop.f32.mrb[14].mxu1 }
 0x1d8   : > { %1417 = vst.msk [vmem:[%s2250_s25 + $0x78] sm:$0xff] %vm239_vm1, %v1916_v16  ;;  %v1153_v17 = vpop.f32.mrb[15].mxu1 }
 0x1d9   : > { %1416 = vst.msk [vmem:[%s2250_s25 + $0x70] sm:$0xff] %vm239_vm1, %v1153_v17 }
 0x1db   : > { %v1919_v18 = vpop.f32.mrb[16].mxu1 }
 0x1dc   : > { %1419 = vst.msk [vmem:[%s2250_s25 + $0x88] sm:$0xff] %vm239_vm1, %v1919_v18  ;;  %v1163_v19 = vpop.f32.mrb[17].mxu1 }
 0x1dd   : > { %1418 = vst.msk [vmem:[%s2250_s25 + $0x80] sm:$0xff] %vm239_vm1, %v1163_v19 }
 0x1df   : > { %v1922_v20 = vpop.f32.mrb[18].mxu1 }
 0x1e0   : > { %1421 = vst.msk [vmem:[%s2250_s25 + $0x98] sm:$0xff] %vm239_vm1, %v1922_v20  ;;  %v1173_v21 = vpop.f32.mrb[19].mxu1 }
 0x1e1   : > { %1420 = vst.msk [vmem:[%s2250_s25 + $0x90] sm:$0xff] %vm239_vm1, %v1173_v21 }
 0x1e3   : > { %v1925_v22 = vpop.f32.mrb[20].mxu1 }
 0x1e4   : > { %1423 = vst.msk [vmem:[%s2250_s25 + $0xa8] sm:$0xff] %vm239_vm1, %v1925_v22  ;;  %v1183_v23 = vpop.f32.mrb[21].mxu1 }
 0x1e5   : > { %1422 = vst.msk [vmem:[%s2250_s25 + $0xa0] sm:$0xff] %vm239_vm1, %v1183_v23 }
 0x1e7   : > { %v1928_v24 = vpop.f32.mrb[22].mxu1 }
 0x1e8   : > { %1425 = vst.msk [vmem:[%s2250_s25 + $0xb8] sm:$0xff] %vm239_vm1, %v1928_v24  ;;  %v1193_v25 = vpop.f32.mrb[23].mxu1 }
 0x1e9   : > { %1424 = vst.msk [vmem:[%s2250_s25 + $0xb0] sm:$0xff] %vm239_vm1, %v1193_v25 }
 0x1eb   : > { %v1931_v26 = vpop.f32.mrb[24].mxu1 }
 0x1ec   : > { %1427 = vst.msk [vmem:[%s2250_s25 + $0xc8] sm:$0xff] %vm239_vm1, %v1931_v26  ;;  %v1203_v27 = vpop.f32.mrb[25].mxu1 }
 0x1ed   : > { %1426 = vst.msk [vmem:[%s2250_s25 + $0xc0] sm:$0xff] %vm239_vm1, %v1203_v27 }
 0x1ef   : > { %v1934_v28 = vpop.f32.mrb[26].mxu1 }
 0x1f0   : > { %1429 = vst.msk [vmem:[%s2250_s25 + $0xd8] sm:$0xff] %vm239_vm1, %v1934_v28  ;;  %v1213_v29 = vpop.f32.mrb[27].mxu1 }
 0x1f1   : > { %1428 = vst.msk [vmem:[%s2250_s25 + $0xd0] sm:$0xff] %vm239_vm1, %v1213_v29 }
 0x1f3   : > { %v1937_v30 = vpop.f32.mrb[28].mxu1 }
 0x1f4   : > { %1431 = vst.msk [vmem:[%s2250_s25 + $0xe8] sm:$0xff] %vm239_vm1, %v1937_v30  ;;  %v1223_v31 = vpop.f32.mrb[29].mxu1 }
 0x1f5   : > { %1430 = vst.msk [vmem:[%s2250_s25 + $0xe0] sm:$0xff] %vm239_vm1, %v1223_v31 }
 0x1f7   : > { %v1940_v32 = vpop.f32.mrb[30].mxu1 }
 0x1f8   : > { %1433 = vst.msk [vmem:[%s2250_s25 + $0xf8] sm:$0xff] %vm239_vm1, %v1940_v32  ;;  %v1233_v33 = vpop.f32.mrb[31].mxu1 }
 0x1f9   : > { %1432 = vst.msk [vmem:[%s2250_s25 + $0xf0] sm:$0xff] %vm239_vm1, %v1233_v33 }
 0x1fb   : > { %v1943_v34 = vpop.f32.mrb[32].mxu1 }
 0x1fc   : > { %1435 = vst.msk [vmem:[%s2250_s25 + $0x108] sm:$0xff] %vm239_vm1, %v1943_v34  ;;  %v1243_v35 = vpop.f32.mrb[33].mxu1 }
 0x1fd   : > { %1434 = vst.msk [vmem:[%s2250_s25 + $0x100] sm:$0xff] %vm239_vm1, %v1243_v35 }
 0x1ff   : > { %v1946_v36 = vpop.f32.mrb[34].mxu1 }
 0x200   : > { %1437 = vst.msk [vmem:[%s2250_s25 + $0x118] sm:$0xff] %vm239_vm1, %v1946_v36  ;;  %v1253_v37 = vpop.f32.mrb[35].mxu1 }
 0x201   : > { %1436 = vst.msk [vmem:[%s2250_s25 + $0x110] sm:$0xff] %vm239_vm1, %v1253_v37 }
 0x203   : > { %v1949_v38 = vpop.f32.mrb[36].mxu1 }
 0x204   : > { %1439 = vst.msk [vmem:[%s2250_s25 + $0x128] sm:$0xff] %vm239_vm1, %v1949_v38  ;;  %v1263_v39 = vpop.f32.mrb[37].mxu1 }
 0x205   : > { %1438 = vst.msk [vmem:[%s2250_s25 + $0x120] sm:$0xff] %vm239_vm1, %v1263_v39 }
 0x207   : > { %v1952_v40 = vpop.f32.mrb[38].mxu1 }
 0x208   : > { %1441 = vst.msk [vmem:[%s2250_s25 + $0x138] sm:$0xff] %vm239_vm1, %v1952_v40  ;;  %v1273_v41 = vpop.f32.mrb[39].mxu1 }
 0x209   : > { %1440 = vst.msk [vmem:[%s2250_s25 + $0x130] sm:$0xff] %vm239_vm1, %v1273_v41 }
 0x20b   : > { %v1955_v42 = vpop.f32.mrb[40].mxu1 }
 0x20c   : > { %1443 = vst.msk [vmem:[%s2250_s25 + $0x148] sm:$0xff] %vm239_vm1, %v1955_v42  ;;  %v1283_v43 = vpop.f32.mrb[41].mxu1 }
 0x20d   : > { %1442 = vst.msk [vmem:[%s2250_s25 + $0x140] sm:$0xff] %vm239_vm1, %v1283_v43 }
 0x20f   : > { %v1958_v44 = vpop.f32.mrb[42].mxu1 }
 0x210   : > { %1445 = vst.msk [vmem:[%s2250_s25 + $0x158] sm:$0xff] %vm239_vm1, %v1958_v44  ;;  %v1293_v45 = vpop.f32.mrb[43].mxu1 }
 0x211   : > { %1444 = vst.msk [vmem:[%s2250_s25 + $0x150] sm:$0xff] %vm239_vm1, %v1293_v45 }
 0x213   : > { %v1961_v46 = vpop.f32.mrb[44].mxu1 }
 0x214   : > { %1447 = vst.msk [vmem:[%s2250_s25 + $0x168] sm:$0xff] %vm239_vm1, %v1961_v46  ;;  %v1303_v47 = vpop.f32.mrb[45].mxu1 }
 0x215   : > { %1446 = vst.msk [vmem:[%s2250_s25 + $0x160] sm:$0xff] %vm239_vm1, %v1303_v47 }
 0x217   : > { %v1964_v48 = vpop.f32.mrb[46].mxu1 }
 0x218   : > { %1449 = vst.msk [vmem:[%s2250_s25 + $0x178] sm:$0xff] %vm239_vm1, %v1964_v48  ;;  %v1313_v49 = vpop.f32.mrb[47].mxu1 }
 0x219   : > { %1448 = vst.msk [vmem:[%s2250_s25 + $0x170] sm:$0xff] %vm239_vm1, %v1313_v49 }
 0x21b   : > { %v1967_v50 = vpop.f32.mrb[48].mxu1 }
 0x21c   : > { %1451 = vst.msk [vmem:[%s2250_s25 + $0x188] sm:$0xff] %vm239_vm1, %v1967_v50  ;;  %v1323_v51 = vpop.f32.mrb[49].mxu1 }
 0x21d   : > { %1450 = vst.msk [vmem:[%s2250_s25 + $0x180] sm:$0xff] %vm239_vm1, %v1323_v51 }
 0x21f   : > { %v1970_v52 = vpop.f32.mrb[50].mxu1 }
 0x220   : > { %1453 = vst.msk [vmem:[%s2250_s25 + $0x198] sm:$0xff] %vm239_vm1, %v1970_v52  ;;  %v1333_v53 = vpop.f32.mrb[51].mxu1 }
 0x221   : > { %1452 = vst.msk [vmem:[%s2250_s25 + $0x190] sm:$0xff] %vm239_vm1, %v1333_v53 }
 0x223   : > { %v1973_v54 = vpop.f32.mrb[52].mxu1 }
 0x224   : > { %1455 = vst.msk [vmem:[%s2250_s25 + $0x1a8] sm:$0xff] %vm239_vm1, %v1973_v54  ;;  %v1343_v55 = vpop.f32.mrb[53].mxu1 }
 0x225   : > { %1454 = vst.msk [vmem:[%s2250_s25 + $0x1a0] sm:$0xff] %vm239_vm1, %v1343_v55 }
 0x227   : > { %v1976_v56 = vpop.f32.mrb[54].mxu1 }
 0x228   : > { %1457 = vst.msk [vmem:[%s2250_s25 + $0x1b8] sm:$0xff] %vm239_vm1, %v1976_v56  ;;  %v1353_v57 = vpop.f32.mrb[55].mxu1 }
 0x229   : > { %1456 = vst.msk [vmem:[%s2250_s25 + $0x1b0] sm:$0xff] %vm239_vm1, %v1353_v57 }
 0x22b   : > { %v1979_v58 = vpop.f32.mrb[56].mxu1 }
 0x22c   : > { %1459 = vst.msk [vmem:[%s2250_s25 + $0x1c8] sm:$0xff] %vm239_vm1, %v1979_v58  ;;  %v1363_v59 = vpop.f32.mrb[57].mxu1 }
 0x22d   : > { %1458 = vst.msk [vmem:[%s2250_s25 + $0x1c0] sm:$0xff] %vm239_vm1, %v1363_v59 }
 0x22f   : > { %v1982_v60 = vpop.f32.mrb[58].mxu1 }
 0x230   : > { %1461 = vst.msk [vmem:[%s2250_s25 + $0x1d8] sm:$0xff] %vm239_vm1, %v1982_v60  ;;  %v1373_v61 = vpop.f32.mrb[59].mxu1 }
 0x231   : > { %1460 = vst.msk [vmem:[%s2250_s25 + $0x1d0] sm:$0xff] %vm239_vm1, %v1373_v61 }
 0x233   : > { %v1985_v62 = vpop.f32.mrb[60].mxu1 }
 0x234   : > { %1463 = vst.msk [vmem:[%s2250_s25 + $0x1e8] sm:$0xff] %vm239_vm1, %v1985_v62  ;;  %v1383_v63 = vpop.f32.mrb[61].mxu1 }
 0x235   : > { %1462 = vst.msk [vmem:[%s2250_s25 + $0x1e0] sm:$0xff] %vm239_vm1, %v1383_v63 }
 0x237   : > { %v1988_v0 = vpop.f32.mrb[62].mxu1 }
 0x238   : > { %1465 = vst.msk [vmem:[%s2250_s25 + $0x1f8] sm:$0xff] %vm239_vm1, %v1988_v0  ;;  %v1393_v1 = vpop.f32.mrb[63].mxu1 }
 0x239   : > { %1464 = vst.msk [vmem:[%s2250_s25 + $0x1f0] sm:$0xff] %vm239_vm1, %v1393_v1 }
 0x23a PF: > { %s13_s12 = sadd.s32 1, %s2003_s12  }
 0x23b   : > { %p10_p4 = scmp.ge.s32.totalorder %s13_s12, 4  }
 0x23d   :  { %12 = sbr.rel (!%p10_p4) target bundleno = 1 (0x1), region = 62 }

</bundles_post_ra>
